<compile_context>
chip_gen: v7x
topology: tpu7x:2x2x1
jax: 0.10.0
libtpu: 0.0.40
codegen_flags: <defaults>
</compile_context>

<pallas_src>
import functools

import numpy as np
import jax
import jax.numpy as jnp
from jax import lax
from jax.experimental import pallas as pl
from jax.experimental.pallas import tpu as pltpu

VOCAB = 311


def _sigmoid(x):
    # approx EUP reciprocal: single vrcp issue instead of an exact divide chain
    return pl.reciprocal(1.0 + jnp.exp(-x), approx=True)


def seq_encoder_kernel(
    ids_ref,                      # (L*B, 1) int32 token ids (sequence-major)
    embed_ref,                    # (VOCAB_PAD, E) bf16 embedding table
    wf_ref,                       # (E, 6H) bf16 fwd input weights, interleaved cols
    wb_ref,                       # (E, 6H) bf16 bwd input weights, interleaved cols
    bi_ref,                       # (1, 6H) f32 input bias (+ folded r/z hidden bias)
    whh_ref,                      # (2H, 6H) f32 block-diag hidden weights (pre-T)
    bhhn_ref,                     # (1, 2H) f32 n-gate hidden biases [n_f | n_b]
    s_ref,                        # (L, L*B) f32 0/1 group-sum selector
    wac_ref, bac_ref,             # (2H, 2H), (1, 2H) folded attention projection
    wemb_ref, bemb_ref,           # (2H, OUT), (1, OUT)
    out_ref,                      # (L, OUT)
    *, L, B,
):
    LB = L * B
    VOCAB_PAD = embed_ref.shape[0]
    H = whh_ref.shape[0] // 2
    f32 = jnp.float32
    bf16 = jnp.bfloat16

    # ---- embedding lookup as one-hot matmul (nn.Embedding); bf16 x bf16 ----
    ids = ids_ref[...]                                                   # (LB, 1)
    vocab_iota = lax.broadcasted_iota(jnp.int32, (LB, VOCAB_PAD), 1)
    onehot = (vocab_iota == ids).astype(bf16)                            # exact 0/1
    emb = jnp.dot(onehot, embed_ref[...], preferred_element_type=f32)    # (LB, E)
    emb_bf = emb.astype(bf16)                                            # lossless: table is bf16

    # ---- hoisted input projections, interleaved cols [r_f|r_b|z_f|z_b|n_f|n_b] ----
    gi_f = jnp.dot(emb_bf, wf_ref[...], preferred_element_type=f32) + bi_ref[...]
    gi_b = jnp.dot(emb_bf, wb_ref[...], preferred_element_type=f32)      # (LB, 6H)

    whh = whh_ref[...]                                                   # (2H, 6H)
    bhh_n = jnp.broadcast_to(bhhn_ref[...], (B, 2 * H))                  # hoisted broadcast

    # ---- fused bidirectional GRU recurrence (statically unrolled) ----
    # state h = [h_fwd | h_bwd] (B, 2H); one (B,2H)x(2H,6H) matmul per step.
    h = jnp.zeros((B, 2 * H), f32)
    fwd, bwd = [], []
    for t in range(L):
        # fwd gates read timestep t, bwd gates read timestep L-1-t (static slices)
        gi_t = gi_f[t * B:(t + 1) * B, :] + gi_b[(L - 1 - t) * B:(L - t) * B, :]
        gh = jnp.dot(h, whh, preferred_element_type=f32)                 # (B, 6H)
        r = _sigmoid(gi_t[:, 0:2 * H] + gh[:, 0:2 * H])
        z = _sigmoid(gi_t[:, 2 * H:4 * H] + gh[:, 2 * H:4 * H])
        n = jnp.tanh(gi_t[:, 4 * H:6 * H] + r * (gh[:, 4 * H:6 * H] + bhh_n))
        h = (1.0 - z) * n + z * h
        fwd.append(h[:, 0:H])
        bwd.append(h[:, H:2 * H])

    # register-resident out_state: row block t = [fwd step t | bwd step L-1-t]
    os = jnp.concatenate(
        [jnp.concatenate(fwd, axis=0), jnp.concatenate(bwd[::-1], axis=0)],
        axis=1)                                                          # (LB, 2H)

    # ---- word attention (folded projections) + output ----
    cb = jnp.dot(os, wac_ref[...], preferred_element_type=f32) + bac_ref[...]
    # softmax over the batch axis within each timestep group (PyTorch dim=1);
    # subtracting the global per-column max is exact for the group softmax.
    cmax = jnp.max(cb, axis=0, keepdims=True)                            # (1, 2H)
    e = jnp.exp(cb - cmax)                                               # (LB, 2H)

    S = s_ref[...]                                                       # (L, LB)
    denom = jnp.dot(S, e, preferred_element_type=f32)                    # (L, 2H)
    inv = pl.reciprocal(denom, approx=True)                              # EUP
    sent = jnp.dot(S, os * e, preferred_element_type=f32) * inv          # (L, 2H)

    out_ref[...] = (jnp.dot(sent, wemb_ref[...], preferred_element_type=f32)
                    + bemb_ref[...])                                     # (L, OUT)


def seq_encoder_forward(inp, params):
    L, B = inp.shape
    H = params["whh_f"].shape[1]
    E = params["wih_f"].shape[1]
    OUT = params["w_emb"].shape[0]
    f32 = jnp.float32
    bf16 = jnp.bfloat16

    def g3(w):  # split stacked GRU gates [r; z; n]
        return w[0:H], w[H:2 * H], w[2 * H:3 * H]

    wir_f, wiz_f, win_f = g3(params["wih_f"])
    wir_b, wiz_b, win_b = g3(params["wih_b"])
    whr_f, whz_f, whn_f = g3(params["whh_f"])
    whr_b, whz_b, whn_b = g3(params["whh_b"])
    bir_f, biz_f, bin_f = g3(params["bih_f"])
    bir_b, biz_b, bin_b = g3(params["bih_b"])
    bhr_f, bhz_f, bhn_f = g3(params["bhh_f"])
    bhr_b, bhz_b, bhn_b = g3(params["bhh_b"])

    zEH = jnp.zeros((E, H), f32)
    zHH = jnp.zeros((H, H), f32)

    # Interleaved column layout: [r_f | r_b | z_f | z_b | n_f | n_b]
    wf_sched = jnp.concatenate([wir_f.T, zEH, wiz_f.T, zEH, win_f.T, zEH], axis=1)
    wb_sched = jnp.concatenate([zEH, wir_b.T, zEH, wiz_b.T, zEH, win_b.T], axis=1)

    # Input bias with the r/z hidden biases folded in (n hidden bias stays in-loop,
    # since it is multiplied by the reset gate).
    bi_all = jnp.concatenate([bir_f + bhr_f, bir_b + bhr_b,
                              biz_f + bhz_f, biz_b + bhz_b,
                              bin_f, bin_b]).reshape(1, -1)
    bhh_n = jnp.concatenate([bhn_f, bhn_b]).reshape(1, -1)               # (1, 2H)

    # Block-diagonal hidden weights: fwd state rows feed fwd columns only.
    whh_top = jnp.concatenate([whr_f.T, zHH, whz_f.T, zHH, whn_f.T, zHH], axis=1)
    whh_bot = jnp.concatenate([zHH, whr_b.T, zHH, whz_b.T, zHH, whn_b.T], axis=1)
    whh_cat = jnp.concatenate([whh_top, whh_bot], axis=0)                # (2H, 6H)

    # Folded attention projections: cb = os @ (w_attn.T @ w_comb.T) + b_attn @ w_comb.T
    w_ac = params["w_attn"].T @ params["w_comb"].T                       # (2H, 2H)
    b_ac = params["b_attn"].reshape(1, -1) @ params["w_comb"].T          # (1, 2H)

    # 0/1 group-sum selector, built on the host (constant wrt (L, B)).
    S = (jnp.arange(L * B)[None, :] // B == jnp.arange(L)[:, None]).astype(f32)

    # Pad embedding table to a lane-aligned vocab; bf16 storage (one-hot lookup
    # is exact, rounding of table values is well inside tolerance).
    vocab = params["embed"].shape[0]
    vocab_pad = ((vocab + 127) // 128) * 128
    embed_pad = jnp.pad(params["embed"].astype(f32),
                        ((0, vocab_pad - vocab), (0, 0))).astype(bf16)

    args = (
        inp.reshape(L * B, 1).astype(jnp.int32),
        embed_pad,
        wf_sched.astype(bf16), wb_sched.astype(bf16),
        bi_all.astype(f32),
        whh_cat.astype(f32), bhh_n.astype(f32),
        S,
        w_ac.astype(f32), b_ac.astype(f32),
        params["w_emb"].T.astype(f32), params["b_emb"].reshape(1, -1).astype(f32),
    )
    vmem = pl.BlockSpec(memory_space=pltpu.MemorySpace.VMEM)
    kernel = functools.partial(seq_encoder_kernel, L=L, B=B)
    return pl.pallas_call(
        kernel,
        out_shape=jax.ShapeDtypeStruct((L, OUT), f32),
        in_specs=[vmem] * len(args),
        out_specs=vmem,
        compiler_params=pltpu.CompilerParams(vmem_limit_bytes=8 * 1024 * 1024),
    )(*args)


def seq_encoder_reference(inp, params):
    """Pure-JAX reference mirroring the PyTorch forward pass."""
    emb_out = jnp.take(params["embed"], inp, axis=0).astype(jnp.float32)
    H = params["whh_f"].shape[1]

    def gru_dir(x_seq, wih, whh, bih, bhh, reverse):
        if reverse:
            x_seq = x_seq[::-1]

        def step(h, x_t):
            gi = x_t @ wih.T + bih
            gh = h @ whh.T + bhh
            r = 1.0 / (1.0 + jnp.exp(-(gi[:, :H] + gh[:, :H])))
            z = 1.0 / (1.0 + jnp.exp(-(gi[:, H:2 * H] + gh[:, H:2 * H])))
            n = jnp.tanh(gi[:, 2 * H:] + r * gh[:, 2 * H:])
            h_new = (1.0 - z) * n + z * h
            return h_new, h_new

        h0 = jnp.zeros((x_seq.shape[1], H), jnp.float32)
        _, outs = lax.scan(step, h0, x_seq)
        if reverse:
            outs = outs[::-1]
        return outs

    out_f = gru_dir(emb_out, params["wih_f"], params["whh_f"],
                    params["bih_f"], params["bhh_f"], reverse=False)
    out_b = gru_dir(emb_out, params["wih_b"], params["whh_b"],
                    params["bih_b"], params["bhh_b"], reverse=True)
    out_state = jnp.concatenate([out_f, out_b], axis=-1)                 # (L, B, 2H)
    word_ann = out_state @ params["w_attn"].T + params["b_attn"]
    comb = word_ann @ params["w_comb"].T
    attn = jax.nn.softmax(comb, axis=1)                                  # dim=1 (batch)
    sent = jnp.sum(out_state * attn, axis=1)                             # (L, 2H)
    return sent @ params["w_emb"].T + params["b_emb"]


if __name__ == "__main__":
    # Small shapes consistent with the module:
    L, B, E, H, OUT = 8, 4, 16, 32, 8   # seq, batch, embedsize, hid_size, out_size

    key = jax.random.PRNGKey(0)
    keys = jax.random.split(key, 16)

    def w(k, shape, scale=0.1):
        return (scale * jax.random.normal(k, shape)).astype(jnp.float32)

    params = {
        "embed":  w(keys[0], (VOCAB, E)),
        "wih_f":  w(keys[1], (3 * H, E)),
        "whh_f":  w(keys[2], (3 * H, H)),
        "bih_f":  w(keys[3], (3 * H,)),
        "bhh_f":  w(keys[4], (3 * H,)),
        "wih_b":  w(keys[5], (3 * H, E)),
        "whh_b":  w(keys[6], (3 * H, H)),
        "bih_b":  w(keys[7], (3 * H,)),
        "bhh_b":  w(keys[8], (3 * H,)),
        "w_attn": w(keys[9], (2 * H, 2 * H)),
        "b_attn": w(keys[10], (2 * H,)),
        "w_comb": w(keys[11], (2 * H, 2 * H)),
        "w_emb":  w(keys[12], (OUT, 2 * H)),
        "b_emb":  w(keys[13], (OUT,)),
    }
    inp = jax.random.randint(keys[14], (L, B), 0, VOCAB, dtype=jnp.int32)

    z_seq = seq_encoder_forward(inp, params)
    z_seq = jax.block_until_ready(z_seq)
    assert z_seq.shape == (L, OUT), z_seq.shape

    ref = seq_encoder_reference(inp, params)
    np.testing.assert_allclose(np.asarray(z_seq), np.asarray(ref), rtol=2e-2, atol=2e-2)

    print("KERNEL_OK")
</pallas_src>

<mosaic_0001>
module attributes {stable_mosaic.version = 11 : i64} {
  func.func @seq_encoder_kernel(%arg0: memref<32x1xi32, #tpu.memory_space<vmem>>, %arg1: memref<384x16xbf16, #tpu.memory_space<vmem>>, %arg2: memref<16x192xbf16, #tpu.memory_space<vmem>>, %arg3: memref<16x192xbf16, #tpu.memory_space<vmem>>, %arg4: memref<1x192xf32, #tpu.memory_space<vmem>>, %arg5: memref<64x192xf32, #tpu.memory_space<vmem>>, %arg6: memref<1x64xf32, #tpu.memory_space<vmem>>, %arg7: memref<8x32xf32, #tpu.memory_space<vmem>>, %arg8: memref<64x64xf32, #tpu.memory_space<vmem>>, %arg9: memref<1x64xf32, #tpu.memory_space<vmem>>, %arg10: memref<64x8xf32, #tpu.memory_space<vmem>>, %arg11: memref<1x8xf32, #tpu.memory_space<vmem>>, %arg12: memref<8x8xf32, #tpu.memory_space<vmem>>) attributes {dimension_semantics = [], scalar_prefetch = 0 : i64, scratch_operands = 0 : i64, tpu.core_type = #tpu.core_type<tc>} {
    %c0 = arith.constant 0 : index
    %c0_0 = arith.constant 0 : index
    %0 = vector.load %arg0[%c0, %c0_0] : memref<32x1xi32, #tpu.memory_space<vmem>>, vector<32x1xi32>
    %1 = tpu.iota {dimensions = array<i32: 1>} : vector<32x384xi32>
    %2 = vector.broadcast %0 : vector<32x1xi32> to vector<32x384xi32>
    %3 = arith.cmpi eq, %1, %2 : vector<32x384xi32>
    %4 = arith.extui %3 : vector<32x384xi1> to vector<32x384xi32>
    %5 = arith.sitofp %4 : vector<32x384xi32> to vector<32x384xf32>
    %6 = arith.truncf %5 : vector<32x384xf32> to vector<32x384xbf16>
    %c0_1 = arith.constant 0 : index
    %c0_2 = arith.constant 0 : index
    %7 = vector.load %arg1[%c0_1, %c0_2] : memref<384x16xbf16, #tpu.memory_space<vmem>>, vector<384x16xbf16>
    %cst = arith.constant dense<0.000000e+00> : vector<32x16xf32>
    %8 = tpu.matmul %6, %7, %cst {dimension_numbers = #tpu.dot_dimension_numbers<[1], [0], [0], [1], [0, 0, 1, 1], [], []>} : vector<32x384xbf16>, vector<384x16xbf16>, vector<32x16xf32> -> vector<32x16xf32>
    %9 = arith.truncf %8 : vector<32x16xf32> to vector<32x16xbf16>
    %c0_3 = arith.constant 0 : index
    %c0_4 = arith.constant 0 : index
    %10 = vector.load %arg2[%c0_3, %c0_4] : memref<16x192xbf16, #tpu.memory_space<vmem>>, vector<16x192xbf16>
    %cst_5 = arith.constant dense<0.000000e+00> : vector<32x192xf32>
    %11 = tpu.matmul %9, %10, %cst_5 {dimension_numbers = #tpu.dot_dimension_numbers<[1], [0], [0], [1], [0, 0, 1, 1], [], []>} : vector<32x16xbf16>, vector<16x192xbf16>, vector<32x192xf32> -> vector<32x192xf32>
    %c0_6 = arith.constant 0 : index
    %c0_7 = arith.constant 0 : index
    %12 = vector.load %arg4[%c0_6, %c0_7] : memref<1x192xf32, #tpu.memory_space<vmem>>, vector<1x192xf32>
    %13 = vector.broadcast %12 : vector<1x192xf32> to vector<32x192xf32>
    %14 = arith.addf %11, %13 : vector<32x192xf32>
    %c0_8 = arith.constant 0 : index
    %c0_9 = arith.constant 0 : index
    %15 = vector.load %arg3[%c0_8, %c0_9] : memref<16x192xbf16, #tpu.memory_space<vmem>>, vector<16x192xbf16>
    %cst_10 = arith.constant dense<0.000000e+00> : vector<32x192xf32>
    %16 = tpu.matmul %9, %15, %cst_10 {dimension_numbers = #tpu.dot_dimension_numbers<[1], [0], [0], [1], [0, 0, 1, 1], [], []>} : vector<32x16xbf16>, vector<16x192xbf16>, vector<32x192xf32> -> vector<32x192xf32>
    %c0_11 = arith.constant 0 : index
    %c0_12 = arith.constant 0 : index
    %17 = vector.load %arg5[%c0_11, %c0_12] : memref<64x192xf32, #tpu.memory_space<vmem>>, vector<64x192xf32>
    %c0_13 = arith.constant 0 : index
    %c0_14 = arith.constant 0 : index
    %18 = vector.load %arg6[%c0_13, %c0_14] : memref<1x64xf32, #tpu.memory_space<vmem>>, vector<1x64xf32>
    %19 = vector.shape_cast %18 : vector<1x64xf32> to vector<1x64xf32>
    %20 = vector.broadcast %19 : vector<1x64xf32> to vector<4x64xf32>
    %cst_15 = arith.constant 0.000000e+00 : f32
    %21 = vector.broadcast %cst_15 : f32 to vector<4x64xf32>
    %22 = vector.extract_strided_slice %14 {offsets = [0, 0], sizes = [4, 192], strides = [1, 1]} : vector<32x192xf32> to vector<4x192xf32>
    %23 = vector.extract_strided_slice %16 {offsets = [28, 0], sizes = [4, 192], strides = [1, 1]} : vector<32x192xf32> to vector<4x192xf32>
    %24 = arith.addf %22, %23 : vector<4x192xf32>
    %cst_16 = arith.constant dense<0.000000e+00> : vector<4x192xf32>
    %25 = tpu.matmul %21, %17, %cst_16 {dimension_numbers = #tpu.dot_dimension_numbers<[1], [0], [0], [1], [0, 0, 1, 1], [], []>} : vector<4x64xf32>, vector<64x192xf32>, vector<4x192xf32> -> vector<4x192xf32>
    %26 = vector.extract_strided_slice %24 {offsets = [0, 0], sizes = [4, 64], strides = [1, 1]} : vector<4x192xf32> to vector<4x64xf32>
    %27 = vector.extract_strided_slice %25 {offsets = [0, 0], sizes = [4, 64], strides = [1, 1]} : vector<4x192xf32> to vector<4x64xf32>
    %28 = arith.addf %26, %27 : vector<4x64xf32>
    %cst_17 = arith.constant 0.000000e+00 : f32
    %29 = vector.broadcast %cst_17 : f32 to vector<4x64xf32>
    %30 = arith.subf %29, %28 : vector<4x64xf32>
    %31 = math.exp %30 : vector<4x64xf32>
    %cst_18 = arith.constant 1.000000e+00 : f32
    %32 = vector.broadcast %cst_18 : f32 to vector<4x64xf32>
    %33 = arith.addf %32, %31 : vector<4x64xf32>
    %34 = tpu.reciprocal %33 {approx = true} : vector<4x64xf32> -> vector<4x64xf32>
    %35 = vector.extract_strided_slice %24 {offsets = [0, 64], sizes = [4, 64], strides = [1, 1]} : vector<4x192xf32> to vector<4x64xf32>
    %36 = vector.extract_strided_slice %25 {offsets = [0, 64], sizes = [4, 64], strides = [1, 1]} : vector<4x192xf32> to vector<4x64xf32>
    %37 = arith.addf %35, %36 : vector<4x64xf32>
    %cst_19 = arith.constant 0.000000e+00 : f32
    %38 = vector.broadcast %cst_19 : f32 to vector<4x64xf32>
    %39 = arith.subf %38, %37 : vector<4x64xf32>
    %40 = math.exp %39 : vector<4x64xf32>
    %cst_20 = arith.constant 1.000000e+00 : f32
    %41 = vector.broadcast %cst_20 : f32 to vector<4x64xf32>
    %42 = arith.addf %41, %40 : vector<4x64xf32>
    %43 = tpu.reciprocal %42 {approx = true} : vector<4x64xf32> -> vector<4x64xf32>
    %44 = vector.extract_strided_slice %24 {offsets = [0, 128], sizes = [4, 64], strides = [1, 1]} : vector<4x192xf32> to vector<4x64xf32>
    %45 = vector.extract_strided_slice %25 {offsets = [0, 128], sizes = [4, 64], strides = [1, 1]} : vector<4x192xf32> to vector<4x64xf32>
    %46 = arith.addf %45, %20 : vector<4x64xf32>
    %47 = arith.mulf %34, %46 : vector<4x64xf32>
    %48 = arith.addf %44, %47 : vector<4x64xf32>
    %49 = math.tanh %48 : vector<4x64xf32>
    %cst_21 = arith.constant 1.000000e+00 : f32
    %50 = vector.broadcast %cst_21 : f32 to vector<4x64xf32>
    %51 = arith.subf %50, %43 : vector<4x64xf32>
    %52 = arith.mulf %51, %49 : vector<4x64xf32>
    %53 = arith.mulf %43, %21 : vector<4x64xf32>
    %54 = arith.addf %52, %53 : vector<4x64xf32>
    %55 = vector.extract_strided_slice %54 {offsets = [0, 0], sizes = [4, 32], strides = [1, 1]} : vector<4x64xf32> to vector<4x32xf32>
    %56 = vector.extract_strided_slice %54 {offsets = [0, 32], sizes = [4, 32], strides = [1, 1]} : vector<4x64xf32> to vector<4x32xf32>
    %57 = vector.extract_strided_slice %14 {offsets = [4, 0], sizes = [4, 192], strides = [1, 1]} : vector<32x192xf32> to vector<4x192xf32>
    %58 = vector.extract_strided_slice %16 {offsets = [24, 0], sizes = [4, 192], strides = [1, 1]} : vector<32x192xf32> to vector<4x192xf32>
    %59 = arith.addf %57, %58 : vector<4x192xf32>
    %cst_22 = arith.constant dense<0.000000e+00> : vector<4x192xf32>
    %60 = tpu.matmul %54, %17, %cst_22 {dimension_numbers = #tpu.dot_dimension_numbers<[1], [0], [0], [1], [0, 0, 1, 1], [], []>} : vector<4x64xf32>, vector<64x192xf32>, vector<4x192xf32> -> vector<4x192xf32>
    %61 = vector.extract_strided_slice %59 {offsets = [0, 0], sizes = [4, 64], strides = [1, 1]} : vector<4x192xf32> to vector<4x64xf32>
    %62 = vector.extract_strided_slice %60 {offsets = [0, 0], sizes = [4, 64], strides = [1, 1]} : vector<4x192xf32> to vector<4x64xf32>
    %63 = arith.addf %61, %62 : vector<4x64xf32>
    %cst_23 = arith.constant 0.000000e+00 : f32
    %64 = vector.broadcast %cst_23 : f32 to vector<4x64xf32>
    %65 = arith.subf %64, %63 : vector<4x64xf32>
    %66 = math.exp %65 : vector<4x64xf32>
    %cst_24 = arith.constant 1.000000e+00 : f32
    %67 = vector.broadcast %cst_24 : f32 to vector<4x64xf32>
    %68 = arith.addf %67, %66 : vector<4x64xf32>
    %69 = tpu.reciprocal %68 {approx = true} : vector<4x64xf32> -> vector<4x64xf32>
    %70 = vector.extract_strided_slice %59 {offsets = [0, 64], sizes = [4, 64], strides = [1, 1]} : vector<4x192xf32> to vector<4x64xf32>
    %71 = vector.extract_strided_slice %60 {offsets = [0, 64], sizes = [4, 64], strides = [1, 1]} : vector<4x192xf32> to vector<4x64xf32>
    %72 = arith.addf %70, %71 : vector<4x64xf32>
    %cst_25 = arith.constant 0.000000e+00 : f32
    %73 = vector.broadcast %cst_25 : f32 to vector<4x64xf32>
    %74 = arith.subf %73, %72 : vector<4x64xf32>
    %75 = math.exp %74 : vector<4x64xf32>
    %cst_26 = arith.constant 1.000000e+00 : f32
    %76 = vector.broadcast %cst_26 : f32 to vector<4x64xf32>
    %77 = arith.addf %76, %75 : vector<4x64xf32>
    %78 = tpu.reciprocal %77 {approx = true} : vector<4x64xf32> -> vector<4x64xf32>
    %79 = vector.extract_strided_slice %59 {offsets = [0, 128], sizes = [4, 64], strides = [1, 1]} : vector<4x192xf32> to vector<4x64xf32>
    %80 = vector.extract_strided_slice %60 {offsets = [0, 128], sizes = [4, 64], strides = [1, 1]} : vector<4x192xf32> to vector<4x64xf32>
    %81 = arith.addf %80, %20 : vector<4x64xf32>
    %82 = arith.mulf %69, %81 : vector<4x64xf32>
    %83 = arith.addf %79, %82 : vector<4x64xf32>
    %84 = math.tanh %83 : vector<4x64xf32>
    %cst_27 = arith.constant 1.000000e+00 : f32
    %85 = vector.broadcast %cst_27 : f32 to vector<4x64xf32>
    %86 = arith.subf %85, %78 : vector<4x64xf32>
    %87 = arith.mulf %86, %84 : vector<4x64xf32>
    %88 = arith.mulf %78, %54 : vector<4x64xf32>
    %89 = arith.addf %87, %88 : vector<4x64xf32>
    %90 = vector.extract_strided_slice %89 {offsets = [0, 0], sizes = [4, 32], strides = [1, 1]} : vector<4x64xf32> to vector<4x32xf32>
    %91 = vector.extract_strided_slice %89 {offsets = [0, 32], sizes = [4, 32], strides = [1, 1]} : vector<4x64xf32> to vector<4x32xf32>
    %92 = vector.extract_strided_slice %14 {offsets = [8, 0], sizes = [4, 192], strides = [1, 1]} : vector<32x192xf32> to vector<4x192xf32>
    %93 = vector.extract_strided_slice %16 {offsets = [20, 0], sizes = [4, 192], strides = [1, 1]} : vector<32x192xf32> to vector<4x192xf32>
    %94 = arith.addf %92, %93 : vector<4x192xf32>
    %cst_28 = arith.constant dense<0.000000e+00> : vector<4x192xf32>
    %95 = tpu.matmul %89, %17, %cst_28 {dimension_numbers = #tpu.dot_dimension_numbers<[1], [0], [0], [1], [0, 0, 1, 1], [], []>} : vector<4x64xf32>, vector<64x192xf32>, vector<4x192xf32> -> vector<4x192xf32>
    %96 = vector.extract_strided_slice %94 {offsets = [0, 0], sizes = [4, 64], strides = [1, 1]} : vector<4x192xf32> to vector<4x64xf32>
    %97 = vector.extract_strided_slice %95 {offsets = [0, 0], sizes = [4, 64], strides = [1, 1]} : vector<4x192xf32> to vector<4x64xf32>
    %98 = arith.addf %96, %97 : vector<4x64xf32>
    %cst_29 = arith.constant 0.000000e+00 : f32
    %99 = vector.broadcast %cst_29 : f32 to vector<4x64xf32>
    %100 = arith.subf %99, %98 : vector<4x64xf32>
    %101 = math.exp %100 : vector<4x64xf32>
    %cst_30 = arith.constant 1.000000e+00 : f32
    %102 = vector.broadcast %cst_30 : f32 to vector<4x64xf32>
    %103 = arith.addf %102, %101 : vector<4x64xf32>
    %104 = tpu.reciprocal %103 {approx = true} : vector<4x64xf32> -> vector<4x64xf32>
    %105 = vector.extract_strided_slice %94 {offsets = [0, 64], sizes = [4, 64], strides = [1, 1]} : vector<4x192xf32> to vector<4x64xf32>
    %106 = vector.extract_strided_slice %95 {offsets = [0, 64], sizes = [4, 64], strides = [1, 1]} : vector<4x192xf32> to vector<4x64xf32>
    %107 = arith.addf %105, %106 : vector<4x64xf32>
    %cst_31 = arith.constant 0.000000e+00 : f32
    %108 = vector.broadcast %cst_31 : f32 to vector<4x64xf32>
    %109 = arith.subf %108, %107 : vector<4x64xf32>
    %110 = math.exp %109 : vector<4x64xf32>
    %cst_32 = arith.constant 1.000000e+00 : f32
    %111 = vector.broadcast %cst_32 : f32 to vector<4x64xf32>
    %112 = arith.addf %111, %110 : vector<4x64xf32>
    %113 = tpu.reciprocal %112 {approx = true} : vector<4x64xf32> -> vector<4x64xf32>
    %114 = vector.extract_strided_slice %94 {offsets = [0, 128], sizes = [4, 64], strides = [1, 1]} : vector<4x192xf32> to vector<4x64xf32>
    %115 = vector.extract_strided_slice %95 {offsets = [0, 128], sizes = [4, 64], strides = [1, 1]} : vector<4x192xf32> to vector<4x64xf32>
    %116 = arith.addf %115, %20 : vector<4x64xf32>
    %117 = arith.mulf %104, %116 : vector<4x64xf32>
    %118 = arith.addf %114, %117 : vector<4x64xf32>
    %119 = math.tanh %118 : vector<4x64xf32>
    %cst_33 = arith.constant 1.000000e+00 : f32
    %120 = vector.broadcast %cst_33 : f32 to vector<4x64xf32>
    %121 = arith.subf %120, %113 : vector<4x64xf32>
    %122 = arith.mulf %121, %119 : vector<4x64xf32>
    %123 = arith.mulf %113, %89 : vector<4x64xf32>
    %124 = arith.addf %122, %123 : vector<4x64xf32>
    %125 = vector.extract_strided_slice %124 {offsets = [0, 0], sizes = [4, 32], strides = [1, 1]} : vector<4x64xf32> to vector<4x32xf32>
    %126 = vector.extract_strided_slice %124 {offsets = [0, 32], sizes = [4, 32], strides = [1, 1]} : vector<4x64xf32> to vector<4x32xf32>
    %127 = vector.extract_strided_slice %14 {offsets = [12, 0], sizes = [4, 192], strides = [1, 1]} : vector<32x192xf32> to vector<4x192xf32>
    %128 = vector.extract_strided_slice %16 {offsets = [16, 0], sizes = [4, 192], strides = [1, 1]} : vector<32x192xf32> to vector<4x192xf32>
    %129 = arith.addf %127, %128 : vector<4x192xf32>
    %cst_34 = arith.constant dense<0.000000e+00> : vector<4x192xf32>
    %130 = tpu.matmul %124, %17, %cst_34 {dimension_numbers = #tpu.dot_dimension_numbers<[1], [0], [0], [1], [0, 0, 1, 1], [], []>} : vector<4x64xf32>, vector<64x192xf32>, vector<4x192xf32> -> vector<4x192xf32>
    %131 = vector.extract_strided_slice %129 {offsets = [0, 0], sizes = [4, 64], strides = [1, 1]} : vector<4x192xf32> to vector<4x64xf32>
    %132 = vector.extract_strided_slice %130 {offsets = [0, 0], sizes = [4, 64], strides = [1, 1]} : vector<4x192xf32> to vector<4x64xf32>
    %133 = arith.addf %131, %132 : vector<4x64xf32>
    %cst_35 = arith.constant 0.000000e+00 : f32
    %134 = vector.broadcast %cst_35 : f32 to vector<4x64xf32>
    %135 = arith.subf %134, %133 : vector<4x64xf32>
    %136 = math.exp %135 : vector<4x64xf32>
    %cst_36 = arith.constant 1.000000e+00 : f32
    %137 = vector.broadcast %cst_36 : f32 to vector<4x64xf32>
    %138 = arith.addf %137, %136 : vector<4x64xf32>
    %139 = tpu.reciprocal %138 {approx = true} : vector<4x64xf32> -> vector<4x64xf32>
    %140 = vector.extract_strided_slice %129 {offsets = [0, 64], sizes = [4, 64], strides = [1, 1]} : vector<4x192xf32> to vector<4x64xf32>
    %141 = vector.extract_strided_slice %130 {offsets = [0, 64], sizes = [4, 64], strides = [1, 1]} : vector<4x192xf32> to vector<4x64xf32>
    %142 = arith.addf %140, %141 : vector<4x64xf32>
    %cst_37 = arith.constant 0.000000e+00 : f32
    %143 = vector.broadcast %cst_37 : f32 to vector<4x64xf32>
    %144 = arith.subf %143, %142 : vector<4x64xf32>
    %145 = math.exp %144 : vector<4x64xf32>
    %cst_38 = arith.constant 1.000000e+00 : f32
    %146 = vector.broadcast %cst_38 : f32 to vector<4x64xf32>
    %147 = arith.addf %146, %145 : vector<4x64xf32>
    %148 = tpu.reciprocal %147 {approx = true} : vector<4x64xf32> -> vector<4x64xf32>
    %149 = vector.extract_strided_slice %129 {offsets = [0, 128], sizes = [4, 64], strides = [1, 1]} : vector<4x192xf32> to vector<4x64xf32>
    %150 = vector.extract_strided_slice %130 {offsets = [0, 128], sizes = [4, 64], strides = [1, 1]} : vector<4x192xf32> to vector<4x64xf32>
    %151 = arith.addf %150, %20 : vector<4x64xf32>
    %152 = arith.mulf %139, %151 : vector<4x64xf32>
    %153 = arith.addf %149, %152 : vector<4x64xf32>
    %154 = math.tanh %153 : vector<4x64xf32>
    %cst_39 = arith.constant 1.000000e+00 : f32
    %155 = vector.broadcast %cst_39 : f32 to vector<4x64xf32>
    %156 = arith.subf %155, %148 : vector<4x64xf32>
    %157 = arith.mulf %156, %154 : vector<4x64xf32>
    %158 = arith.mulf %148, %124 : vector<4x64xf32>
    %159 = arith.addf %157, %158 : vector<4x64xf32>
    %160 = vector.extract_strided_slice %159 {offsets = [0, 0], sizes = [4, 32], strides = [1, 1]} : vector<4x64xf32> to vector<4x32xf32>
    %161 = vector.extract_strided_slice %159 {offsets = [0, 32], sizes = [4, 32], strides = [1, 1]} : vector<4x64xf32> to vector<4x32xf32>
    %162 = vector.extract_strided_slice %14 {offsets = [16, 0], sizes = [4, 192], strides = [1, 1]} : vector<32x192xf32> to vector<4x192xf32>
    %163 = vector.extract_strided_slice %16 {offsets = [12, 0], sizes = [4, 192], strides = [1, 1]} : vector<32x192xf32> to vector<4x192xf32>
    %164 = arith.addf %162, %163 : vector<4x192xf32>
    %cst_40 = arith.constant dense<0.000000e+00> : vector<4x192xf32>
    %165 = tpu.matmul %159, %17, %cst_40 {dimension_numbers = #tpu.dot_dimension_numbers<[1], [0], [0], [1], [0, 0, 1, 1], [], []>} : vector<4x64xf32>, vector<64x192xf32>, vector<4x192xf32> -> vector<4x192xf32>
    %166 = vector.extract_strided_slice %164 {offsets = [0, 0], sizes = [4, 64], strides = [1, 1]} : vector<4x192xf32> to vector<4x64xf32>
    %167 = vector.extract_strided_slice %165 {offsets = [0, 0], sizes = [4, 64], strides = [1, 1]} : vector<4x192xf32> to vector<4x64xf32>
    %168 = arith.addf %166, %167 : vector<4x64xf32>
    %cst_41 = arith.constant 0.000000e+00 : f32
    %169 = vector.broadcast %cst_41 : f32 to vector<4x64xf32>
    %170 = arith.subf %169, %168 : vector<4x64xf32>
    %171 = math.exp %170 : vector<4x64xf32>
    %cst_42 = arith.constant 1.000000e+00 : f32
    %172 = vector.broadcast %cst_42 : f32 to vector<4x64xf32>
    %173 = arith.addf %172, %171 : vector<4x64xf32>
    %174 = tpu.reciprocal %173 {approx = true} : vector<4x64xf32> -> vector<4x64xf32>
    %175 = vector.extract_strided_slice %164 {offsets = [0, 64], sizes = [4, 64], strides = [1, 1]} : vector<4x192xf32> to vector<4x64xf32>
    %176 = vector.extract_strided_slice %165 {offsets = [0, 64], sizes = [4, 64], strides = [1, 1]} : vector<4x192xf32> to vector<4x64xf32>
    %177 = arith.addf %175, %176 : vector<4x64xf32>
    %cst_43 = arith.constant 0.000000e+00 : f32
    %178 = vector.broadcast %cst_43 : f32 to vector<4x64xf32>
    %179 = arith.subf %178, %177 : vector<4x64xf32>
    %180 = math.exp %179 : vector<4x64xf32>
    %cst_44 = arith.constant 1.000000e+00 : f32
    %181 = vector.broadcast %cst_44 : f32 to vector<4x64xf32>
    %182 = arith.addf %181, %180 : vector<4x64xf32>
    %183 = tpu.reciprocal %182 {approx = true} : vector<4x64xf32> -> vector<4x64xf32>
    %184 = vector.extract_strided_slice %164 {offsets = [0, 128], sizes = [4, 64], strides = [1, 1]} : vector<4x192xf32> to vector<4x64xf32>
    %185 = vector.extract_strided_slice %165 {offsets = [0, 128], sizes = [4, 64], strides = [1, 1]} : vector<4x192xf32> to vector<4x64xf32>
    %186 = arith.addf %185, %20 : vector<4x64xf32>
    %187 = arith.mulf %174, %186 : vector<4x64xf32>
    %188 = arith.addf %184, %187 : vector<4x64xf32>
    %189 = math.tanh %188 : vector<4x64xf32>
    %cst_45 = arith.constant 1.000000e+00 : f32
    %190 = vector.broadcast %cst_45 : f32 to vector<4x64xf32>
    %191 = arith.subf %190, %183 : vector<4x64xf32>
    %192 = arith.mulf %191, %189 : vector<4x64xf32>
    %193 = arith.mulf %183, %159 : vector<4x64xf32>
    %194 = arith.addf %192, %193 : vector<4x64xf32>
    %195 = vector.extract_strided_slice %194 {offsets = [0, 0], sizes = [4, 32], strides = [1, 1]} : vector<4x64xf32> to vector<4x32xf32>
    %196 = vector.extract_strided_slice %194 {offsets = [0, 32], sizes = [4, 32], strides = [1, 1]} : vector<4x64xf32> to vector<4x32xf32>
    %197 = vector.extract_strided_slice %14 {offsets = [20, 0], sizes = [4, 192], strides = [1, 1]} : vector<32x192xf32> to vector<4x192xf32>
    %198 = vector.extract_strided_slice %16 {offsets = [8, 0], sizes = [4, 192], strides = [1, 1]} : vector<32x192xf32> to vector<4x192xf32>
    %199 = arith.addf %197, %198 : vector<4x192xf32>
    %cst_46 = arith.constant dense<0.000000e+00> : vector<4x192xf32>
    %200 = tpu.matmul %194, %17, %cst_46 {dimension_numbers = #tpu.dot_dimension_numbers<[1], [0], [0], [1], [0, 0, 1, 1], [], []>} : vector<4x64xf32>, vector<64x192xf32>, vector<4x192xf32> -> vector<4x192xf32>
    %201 = vector.extract_strided_slice %199 {offsets = [0, 0], sizes = [4, 64], strides = [1, 1]} : vector<4x192xf32> to vector<4x64xf32>
    %202 = vector.extract_strided_slice %200 {offsets = [0, 0], sizes = [4, 64], strides = [1, 1]} : vector<4x192xf32> to vector<4x64xf32>
    %203 = arith.addf %201, %202 : vector<4x64xf32>
    %cst_47 = arith.constant 0.000000e+00 : f32
    %204 = vector.broadcast %cst_47 : f32 to vector<4x64xf32>
    %205 = arith.subf %204, %203 : vector<4x64xf32>
    %206 = math.exp %205 : vector<4x64xf32>
    %cst_48 = arith.constant 1.000000e+00 : f32
    %207 = vector.broadcast %cst_48 : f32 to vector<4x64xf32>
    %208 = arith.addf %207, %206 : vector<4x64xf32>
    %209 = tpu.reciprocal %208 {approx = true} : vector<4x64xf32> -> vector<4x64xf32>
    %210 = vector.extract_strided_slice %199 {offsets = [0, 64], sizes = [4, 64], strides = [1, 1]} : vector<4x192xf32> to vector<4x64xf32>
    %211 = vector.extract_strided_slice %200 {offsets = [0, 64], sizes = [4, 64], strides = [1, 1]} : vector<4x192xf32> to vector<4x64xf32>
    %212 = arith.addf %210, %211 : vector<4x64xf32>
    %cst_49 = arith.constant 0.000000e+00 : f32
    %213 = vector.broadcast %cst_49 : f32 to vector<4x64xf32>
    %214 = arith.subf %213, %212 : vector<4x64xf32>
    %215 = math.exp %214 : vector<4x64xf32>
    %cst_50 = arith.constant 1.000000e+00 : f32
    %216 = vector.broadcast %cst_50 : f32 to vector<4x64xf32>
    %217 = arith.addf %216, %215 : vector<4x64xf32>
    %218 = tpu.reciprocal %217 {approx = true} : vector<4x64xf32> -> vector<4x64xf32>
    %219 = vector.extract_strided_slice %199 {offsets = [0, 128], sizes = [4, 64], strides = [1, 1]} : vector<4x192xf32> to vector<4x64xf32>
    %220 = vector.extract_strided_slice %200 {offsets = [0, 128], sizes = [4, 64], strides = [1, 1]} : vector<4x192xf32> to vector<4x64xf32>
    %221 = arith.addf %220, %20 : vector<4x64xf32>
    %222 = arith.mulf %209, %221 : vector<4x64xf32>
    %223 = arith.addf %219, %222 : vector<4x64xf32>
    %224 = math.tanh %223 : vector<4x64xf32>
    %cst_51 = arith.constant 1.000000e+00 : f32
    %225 = vector.broadcast %cst_51 : f32 to vector<4x64xf32>
    %226 = arith.subf %225, %218 : vector<4x64xf32>
    %227 = arith.mulf %226, %224 : vector<4x64xf32>
    %228 = arith.mulf %218, %194 : vector<4x64xf32>
    %229 = arith.addf %227, %228 : vector<4x64xf32>
    %230 = vector.extract_strided_slice %229 {offsets = [0, 0], sizes = [4, 32], strides = [1, 1]} : vector<4x64xf32> to vector<4x32xf32>
    %231 = vector.extract_strided_slice %229 {offsets = [0, 32], sizes = [4, 32], strides = [1, 1]} : vector<4x64xf32> to vector<4x32xf32>
    %232 = vector.extract_strided_slice %14 {offsets = [24, 0], sizes = [4, 192], strides = [1, 1]} : vector<32x192xf32> to vector<4x192xf32>
    %233 = vector.extract_strided_slice %16 {offsets = [4, 0], sizes = [4, 192], strides = [1, 1]} : vector<32x192xf32> to vector<4x192xf32>
    %234 = arith.addf %232, %233 : vector<4x192xf32>
    %cst_52 = arith.constant dense<0.000000e+00> : vector<4x192xf32>
    %235 = tpu.matmul %229, %17, %cst_52 {dimension_numbers = #tpu.dot_dimension_numbers<[1], [0], [0], [1], [0, 0, 1, 1], [], []>} : vector<4x64xf32>, vector<64x192xf32>, vector<4x192xf32> -> vector<4x192xf32>
    %236 = vector.extract_strided_slice %234 {offsets = [0, 0], sizes = [4, 64], strides = [1, 1]} : vector<4x192xf32> to vector<4x64xf32>
    %237 = vector.extract_strided_slice %235 {offsets = [0, 0], sizes = [4, 64], strides = [1, 1]} : vector<4x192xf32> to vector<4x64xf32>
    %238 = arith.addf %236, %237 : vector<4x64xf32>
    %cst_53 = arith.constant 0.000000e+00 : f32
    %239 = vector.broadcast %cst_53 : f32 to vector<4x64xf32>
    %240 = arith.subf %239, %238 : vector<4x64xf32>
    %241 = math.exp %240 : vector<4x64xf32>
    %cst_54 = arith.constant 1.000000e+00 : f32
    %242 = vector.broadcast %cst_54 : f32 to vector<4x64xf32>
    %243 = arith.addf %242, %241 : vector<4x64xf32>
    %244 = tpu.reciprocal %243 {approx = true} : vector<4x64xf32> -> vector<4x64xf32>
    %245 = vector.extract_strided_slice %234 {offsets = [0, 64], sizes = [4, 64], strides = [1, 1]} : vector<4x192xf32> to vector<4x64xf32>
    %246 = vector.extract_strided_slice %235 {offsets = [0, 64], sizes = [4, 64], strides = [1, 1]} : vector<4x192xf32> to vector<4x64xf32>
    %247 = arith.addf %245, %246 : vector<4x64xf32>
    %cst_55 = arith.constant 0.000000e+00 : f32
    %248 = vector.broadcast %cst_55 : f32 to vector<4x64xf32>
    %249 = arith.subf %248, %247 : vector<4x64xf32>
    %250 = math.exp %249 : vector<4x64xf32>
    %cst_56 = arith.constant 1.000000e+00 : f32
    %251 = vector.broadcast %cst_56 : f32 to vector<4x64xf32>
    %252 = arith.addf %251, %250 : vector<4x64xf32>
    %253 = tpu.reciprocal %252 {approx = true} : vector<4x64xf32> -> vector<4x64xf32>
    %254 = vector.extract_strided_slice %234 {offsets = [0, 128], sizes = [4, 64], strides = [1, 1]} : vector<4x192xf32> to vector<4x64xf32>
    %255 = vector.extract_strided_slice %235 {offsets = [0, 128], sizes = [4, 64], strides = [1, 1]} : vector<4x192xf32> to vector<4x64xf32>
    %256 = arith.addf %255, %20 : vector<4x64xf32>
    %257 = arith.mulf %244, %256 : vector<4x64xf32>
    %258 = arith.addf %254, %257 : vector<4x64xf32>
    %259 = math.tanh %258 : vector<4x64xf32>
    %cst_57 = arith.constant 1.000000e+00 : f32
    %260 = vector.broadcast %cst_57 : f32 to vector<4x64xf32>
    %261 = arith.subf %260, %253 : vector<4x64xf32>
    %262 = arith.mulf %261, %259 : vector<4x64xf32>
    %263 = arith.mulf %253, %229 : vector<4x64xf32>
    %264 = arith.addf %262, %263 : vector<4x64xf32>
    %265 = vector.extract_strided_slice %264 {offsets = [0, 0], sizes = [4, 32], strides = [1, 1]} : vector<4x64xf32> to vector<4x32xf32>
    %266 = vector.extract_strided_slice %264 {offsets = [0, 32], sizes = [4, 32], strides = [1, 1]} : vector<4x64xf32> to vector<4x32xf32>
    %267 = vector.extract_strided_slice %14 {offsets = [28, 0], sizes = [4, 192], strides = [1, 1]} : vector<32x192xf32> to vector<4x192xf32>
    %268 = vector.extract_strided_slice %16 {offsets = [0, 0], sizes = [4, 192], strides = [1, 1]} : vector<32x192xf32> to vector<4x192xf32>
    %269 = arith.addf %267, %268 : vector<4x192xf32>
    %cst_58 = arith.constant dense<0.000000e+00> : vector<4x192xf32>
    %270 = tpu.matmul %264, %17, %cst_58 {dimension_numbers = #tpu.dot_dimension_numbers<[1], [0], [0], [1], [0, 0, 1, 1], [], []>} : vector<4x64xf32>, vector<64x192xf32>, vector<4x192xf32> -> vector<4x192xf32>
    %271 = vector.extract_strided_slice %269 {offsets = [0, 0], sizes = [4, 64], strides = [1, 1]} : vector<4x192xf32> to vector<4x64xf32>
    %272 = vector.extract_strided_slice %270 {offsets = [0, 0], sizes = [4, 64], strides = [1, 1]} : vector<4x192xf32> to vector<4x64xf32>
    %273 = arith.addf %271, %272 : vector<4x64xf32>
    %cst_59 = arith.constant 0.000000e+00 : f32
    %274 = vector.broadcast %cst_59 : f32 to vector<4x64xf32>
    %275 = arith.subf %274, %273 : vector<4x64xf32>
    %276 = math.exp %275 : vector<4x64xf32>
    %cst_60 = arith.constant 1.000000e+00 : f32
    %277 = vector.broadcast %cst_60 : f32 to vector<4x64xf32>
    %278 = arith.addf %277, %276 : vector<4x64xf32>
    %279 = tpu.reciprocal %278 {approx = true} : vector<4x64xf32> -> vector<4x64xf32>
    %280 = vector.extract_strided_slice %269 {offsets = [0, 64], sizes = [4, 64], strides = [1, 1]} : vector<4x192xf32> to vector<4x64xf32>
    %281 = vector.extract_strided_slice %270 {offsets = [0, 64], sizes = [4, 64], strides = [1, 1]} : vector<4x192xf32> to vector<4x64xf32>
    %282 = arith.addf %280, %281 : vector<4x64xf32>
    %cst_61 = arith.constant 0.000000e+00 : f32
    %283 = vector.broadcast %cst_61 : f32 to vector<4x64xf32>
    %284 = arith.subf %283, %282 : vector<4x64xf32>
    %285 = math.exp %284 : vector<4x64xf32>
    %cst_62 = arith.constant 1.000000e+00 : f32
    %286 = vector.broadcast %cst_62 : f32 to vector<4x64xf32>
    %287 = arith.addf %286, %285 : vector<4x64xf32>
    %288 = tpu.reciprocal %287 {approx = true} : vector<4x64xf32> -> vector<4x64xf32>
    %289 = vector.extract_strided_slice %269 {offsets = [0, 128], sizes = [4, 64], strides = [1, 1]} : vector<4x192xf32> to vector<4x64xf32>
    %290 = vector.extract_strided_slice %270 {offsets = [0, 128], sizes = [4, 64], strides = [1, 1]} : vector<4x192xf32> to vector<4x64xf32>
    %291 = arith.addf %290, %20 : vector<4x64xf32>
    %292 = arith.mulf %279, %291 : vector<4x64xf32>
    %293 = arith.addf %289, %292 : vector<4x64xf32>
    %294 = math.tanh %293 : vector<4x64xf32>
    %cst_63 = arith.constant 1.000000e+00 : f32
    %295 = vector.broadcast %cst_63 : f32 to vector<4x64xf32>
    %296 = arith.subf %295, %288 : vector<4x64xf32>
    %297 = arith.mulf %296, %294 : vector<4x64xf32>
    %298 = arith.mulf %288, %264 : vector<4x64xf32>
    %299 = arith.addf %297, %298 : vector<4x64xf32>
    %300 = vector.extract_strided_slice %299 {offsets = [0, 0], sizes = [4, 32], strides = [1, 1]} : vector<4x64xf32> to vector<4x32xf32>
    %301 = vector.extract_strided_slice %299 {offsets = [0, 32], sizes = [4, 32], strides = [1, 1]} : vector<4x64xf32> to vector<4x32xf32>
    %302 = tpu.concatenate %55, %90, %125, %160, %195, %230, %265, %300 in 0 : vector<4x32xf32>, vector<4x32xf32>, vector<4x32xf32>, vector<4x32xf32>, vector<4x32xf32>, vector<4x32xf32>, vector<4x32xf32>, vector<4x32xf32> -> vector<32x32xf32>
    %303 = tpu.concatenate %301, %266, %231, %196, %161, %126, %91, %56 in 0 : vector<4x32xf32>, vector<4x32xf32>, vector<4x32xf32>, vector<4x32xf32>, vector<4x32xf32>, vector<4x32xf32>, vector<4x32xf32>, vector<4x32xf32> -> vector<32x32xf32>
    %304 = tpu.concatenate %302, %303 in 1 : vector<32x32xf32>, vector<32x32xf32> -> vector<32x64xf32>
    %c0_64 = arith.constant 0 : index
    %c0_65 = arith.constant 0 : index
    %305 = vector.load %arg8[%c0_64, %c0_65] : memref<64x64xf32, #tpu.memory_space<vmem>>, vector<64x64xf32>
    %cst_66 = arith.constant dense<0.000000e+00> : vector<32x64xf32>
    %306 = tpu.matmul %304, %305, %cst_66 {dimension_numbers = #tpu.dot_dimension_numbers<[1], [0], [0], [1], [0, 0, 1, 1], [], []>} : vector<32x64xf32>, vector<64x64xf32>, vector<32x64xf32> -> vector<32x64xf32>
    %c0_67 = arith.constant 0 : index
    %c0_68 = arith.constant 0 : index
    %307 = vector.load %arg9[%c0_67, %c0_68] : memref<1x64xf32, #tpu.memory_space<vmem>>, vector<1x64xf32>
    %308 = vector.broadcast %307 : vector<1x64xf32> to vector<32x64xf32>
    %309 = arith.addf %306, %308 : vector<32x64xf32>
    %cst_69 = arith.constant dense<0xFF800000> : vector<64xf32>
    %310 = vector.multi_reduction <maximumf>, %309, %cst_69 [0] : vector<32x64xf32> to vector<64xf32>
    %311 = vector.shape_cast %310 : vector<64xf32> to vector<1x64xf32>
    %312 = vector.broadcast %311 : vector<1x64xf32> to vector<32x64xf32>
    %313 = arith.subf %309, %312 : vector<32x64xf32>
    %314 = math.exp %313 : vector<32x64xf32>
    %c0_70 = arith.constant 0 : index
    %c0_71 = arith.constant 0 : index
    %315 = vector.load %arg7[%c0_70, %c0_71] : memref<8x32xf32, #tpu.memory_space<vmem>>, vector<8x32xf32>
    %cst_72 = arith.constant dense<0.000000e+00> : vector<8x64xf32>
    %316 = tpu.matmul %315, %314, %cst_72 {dimension_numbers = #tpu.dot_dimension_numbers<[1], [0], [0], [1], [0, 0, 1, 1], [], []>} : vector<8x32xf32>, vector<32x64xf32>, vector<8x64xf32> -> vector<8x64xf32>
    %317 = tpu.reciprocal %316 {approx = true} : vector<8x64xf32> -> vector<8x64xf32>
    %318 = arith.mulf %304, %314 : vector<32x64xf32>
    %cst_73 = arith.constant dense<0.000000e+00> : vector<8x64xf32>
    %319 = tpu.matmul %315, %318, %cst_73 {dimension_numbers = #tpu.dot_dimension_numbers<[1], [0], [0], [1], [0, 0, 1, 1], [], []>} : vector<8x32xf32>, vector<32x64xf32>, vector<8x64xf32> -> vector<8x64xf32>
    %320 = arith.mulf %319, %317 : vector<8x64xf32>
    %c0_74 = arith.constant 0 : index
    %c0_75 = arith.constant 0 : index
    %321 = vector.load %arg10[%c0_74, %c0_75] : memref<64x8xf32, #tpu.memory_space<vmem>>, vector<64x8xf32>
    %cst_76 = arith.constant dense<0.000000e+00> : vector<8x8xf32>
    %322 = tpu.matmul %320, %321, %cst_76 {dimension_numbers = #tpu.dot_dimension_numbers<[1], [0], [0], [1], [0, 0, 1, 1], [], []>} : vector<8x64xf32>, vector<64x8xf32>, vector<8x8xf32> -> vector<8x8xf32>
    %c0_77 = arith.constant 0 : index
    %c0_78 = arith.constant 0 : index
    %323 = vector.load %arg11[%c0_77, %c0_78] : memref<1x8xf32, #tpu.memory_space<vmem>>, vector<1x8xf32>
    %324 = vector.broadcast %323 : vector<1x8xf32> to vector<8x8xf32>
    %325 = arith.addf %322, %324 : vector<8x8xf32>
    %c0_79 = arith.constant 0 : index
    %c0_80 = arith.constant 0 : index
    %326 = vector.load %arg12[%c0_79, %c0_80] : memref<8x8xf32, #tpu.memory_space<vmem>>, vector<8x8xf32>
    tpu.vector_store %arg12[%c0_79, %c0_80], %325 {strides = array<i32>} : memref<8x8xf32, #tpu.memory_space<vmem>>, vector<8x8xf32>,
    return
  }
}

</mosaic_0001>

<bundles_post_ra>
// kernel: tpu_custom_call.1
= control target key start
LH: loop header
LB: loop body
LE: loop exit
PB: predicated region body
PF: predicated region fallthrough
CT: control target
= control target key end

     0   :  { %v2344_v2 = vmov 0   ;;  %s2884_s0 = inlined_call_operand.vmem [shape: s32[32,1], index: 0, kind: input, shape index: {}]   ;;  %s2885_s1 = inlined_call_operand.vmem [shape: bf16[384,16], index: 1, kind: input, shape index: {}]   ;;  %s2886_s2 = inlined_call_operand.vmem [shape: bf16[16,192], index: 2, kind: input, shape index: {}]   ;;  %s2887_s3 = inlined_call_operand.vmem [shape: bf16[16,192], index: 3, kind: input, shape index: {}]   ;;  %s2888_s4 = inlined_call_operand.vmem [shape: f32[1,192], index: 4, kind: input, shape index: {}]   ;;  %s2889_s5 = inlined_call_operand.vmem [shape: f32[64,192], index: 5, kind: input, shape index: {}]   ;;  %s2890_s6 = inlined_call_operand.vmem [shape: f32[1,64], index: 6, kind: input, shape index: {}]   ;;  %s2891_s7 = inlined_call_operand.vmem [shape: f32[8,32], index: 7, kind: input, shape index: {}]   ;;  %s2892_s8 = inlined_call_operand.vmem [shape: f32[64,64], index: 8, kind: input, shape index: {}]   ;;  %s2893_s9 = inlined_call_operand.vmem [shape: f32[1,64], index: 9, kind: input, shape index: {}]   ;;  %s2894_s10 = inlined_call_operand.vmem [shape: f32[64,8], index: 10, kind: input, shape index: {}]   ;;  %s2895_s11 = inlined_call_operand.vmem [shape: f32[1,8], index: 11, kind: input, shape index: {}]   ;;  %s2896_s12 = inlined_call_operand.hbm [shape: f32[8,8], index: 12, kind: output, shape index: {}]  }
   0x1   :  { %v45_v0 = vld [vmem:[%s2884_s0 + $0x10] sm:$0xff]  ;;  %v43_v1 = vld [vmem:[%s2884_s0] sm:$0xff]  ;;  %2231 = vset.pattern.permute.xlu1 %v2344_v2  ;;  %2230 = vset.pattern.permute.xlu0 %v2344_v2  ;;  %v46_v3 = vld [vmem:[%s2884_s0 + $0x18] sm:$0xff] }
   0x2   :  { %v44_v4 = vld [vmem:[%s2884_s0 + $0x8] sm:$0xff]  ;;  %58 = vperm.xlu1 %2231, %v45_v0   ;;  %52 = vperm.xlu0 %2230, %v43_v1   ;;  %v2232_v5 = vld [vmem:[%s2885_s1 + $0x40] sm:$0xff]   ;;  %v2238_v11 = vld [vmem:[%s2885_s1 + $0x50] sm:$0xff]  }
   0x3   :  { %v2233_v6 = vld [vmem:[%s2885_s1 + $0x80] sm:$0xff]   ;;  %1903 = vmatprep.subr.bf16.mxu0 %v2232_v5  ;;  %v2235_v8 = vld [vmem:[%s2885_s1 + $0x48] sm:$0xff]   ;;  %v2239_v12 = vld [vmem:[%s2885_s1 + $0x90] sm:$0xff]  }
   0x4   :  { %v2234_v7 = vld [vmem:[%s2885_s1] sm:$0xff]   ;;  %1972 = vmatprep.subr.bf16.mxu1 %v2233_v6  ;;  %v2236_v9 = vld [vmem:[%s2885_s1 + $0x88] sm:$0xff]   ;;  %v2240_v13 = vld [vmem:[%s2885_s1 + $0x10] sm:$0xff]  }
   0x5   :  { %1904 = vmatpush3.bf16.msra.mxu0 %v2234_v7  ;;  %1973 = vmatpush3.bf16.msra.mxu1 %v2233_v6  ;;  %v2237_v10 = vld [vmem:[%s2885_s1 + $0x8] sm:$0xff]   ;;  %v2241_v14 = vld [vmem:[%s2885_s1 + $0x58] sm:$0xff]   ;;  %v2244_v17 = vld [vmem:[%s2885_s1 + $0x60] sm:$0xff]  }
   0x6   :  { %61 = vperm.xlu1 %2231, %v46_v3   ;;  %55 = vperm.xlu0 %2230, %v44_v4   ;;  %v2242_v15 = vld [vmem:[%s2885_s1 + $0x98] sm:$0xff]   ;;  %v2245_v18 = vld [vmem:[%s2885_s1 + $0xa0] sm:$0xff]   ;;  %v2247_v20 = vld [vmem:[%s2885_s1 + $0x68] sm:$0xff]  }
   0x7   :  { %1905 = vmatprep.subr.bf16.mxu0 %v2235_v8  ;;  %1974 = vmatprep.subr.bf16.mxu1 %v2236_v9  ;;  %v2243_v16 = vld [vmem:[%s2885_s1 + $0x18] sm:$0xff]   ;;  %v2246_v19 = vld [vmem:[%s2885_s1 + $0x20] sm:$0xff]   ;;  %v2248_v21 = vld [vmem:[%s2885_s1 + $0xa8] sm:$0xff]  }
   0x8   :  { %v2249_v22 = vld [vmem:[%s2885_s1 + $0x28] sm:$0xff]   ;;  %v2250_v23 = vld [vmem:[%s2885_s1 + $0x70] sm:$0xff]  }
   0x9   :  { %1906 = vmatpush3.bf16.msra.mxu0 %v2237_v10  ;;  %1975 = vmatpush3.bf16.msra.mxu1 %v2236_v9  ;;  %v2251_v24 = vld [vmem:[%s2885_s1 + $0xb0] sm:$0xff]  }
   0xa   :  { %1907 = vmatprep.subr.bf16.mxu0 %v2238_v11  ;;  %1976 = vmatprep.subr.bf16.mxu1 %v2239_v12  ;;  %v2252_v25 = vld [vmem:[%s2885_s1 + $0x30] sm:$0xff]  }
   0xd   :  { %1908 = vmatpush3.bf16.msra.mxu0 %v2240_v13  ;;  %1977 = vmatpush3.bf16.msra.mxu1 %v2239_v12 }
   0xe   :  { %1909 = vmatprep.subr.bf16.mxu0 %v2241_v14  ;;  %1978 = vmatprep.subr.bf16.mxu1 %v2242_v15 }
  0x11   :  { %1910 = vmatpush3.bf16.msra.mxu0 %v2243_v16  ;;  %1979 = vmatpush3.bf16.msra.mxu1 %v2242_v15 }
  0x12   :  { %1911 = vmatprep.subr.bf16.mxu0 %v2244_v17  ;;  %1980 = vmatprep.subr.bf16.mxu1 %v2245_v18 }
  0x15   :  { %1912 = vmatpush3.bf16.msra.mxu0 %v2246_v19  ;;  %1981 = vmatpush3.bf16.msra.mxu1 %v2245_v18 }
  0x16   :  { %1913 = vmatprep.subr.bf16.mxu0 %v2247_v20  ;;  %1982 = vmatprep.subr.bf16.mxu1 %v2248_v21 }
  0x19   :  { %1914 = vmatpush3.bf16.msra.mxu0 %v2249_v22  ;;  %1983 = vmatpush3.bf16.msra.mxu1 %v2248_v21 }
  0x1a   :  { %17 = vsyncpa [#allocation3], 0  ;;  %1915 = vmatprep.subr.bf16.mxu0 %v2250_v23  ;;  %1984 = vmatprep.subr.bf16.mxu1 %v2251_v24  ;;  %v2253_v26 = vld [vmem:[%s2885_s1 + $0x78] sm:$0xff]   ;;  %v2258_v29 = vld [vmem:[%s2887_s3 + $0x4] ss:$8 sps:$4 sm:$0xff]   ;;  %v47_v30 = vlaneseq  ;;  %s2347_s0 = smov 64  }
  0x1b   :  { %v2254_v27 = vld [vmem:[%s2885_s1 + $0xb8] sm:$0xff]   ;;  %v2256_v38 = vld [vmem:[%s2887_s3] ss:$8 sps:$4 sm:$0xff]   ;;  %v2345_v39 = vmov 1.0|1.0   ;;  %v548_v57 = vld [vmem:[%s2889_s5 + $0x10] sm:$0xff] }
  0x1c   :  { %v2255_v28 = vld [vmem:[%s2885_s1 + $0x38] sm:$0xff]   ;;  %v48_v31 = vand.u32 127, %v47_v30  ;;  %v2259_v40 = vld [vmem:[%s2886_s2] ss:$8 sps:$4 sm:$0xff]   ;;  %v2261_v41 = vld [vmem:[%s2886_s2 + $0x4] ss:$8 sps:$4 sm:$0xff]  }
  0x1d   :  { %1916 = vmatpush3.bf16.msra.mxu0 %v2252_v25  ;;  %1985 = vmatpush3.bf16.msra.mxu1 %v2251_v24  ;;  %v547_v42 = vld [vmem:[%s2889_s5 + $0x8] sm:$0xff]  ;;  %v549_v43 = vld [vmem:[%s2889_s5 + $0x18] sm:$0xff]  ;;  %v546_v56 = vld [vmem:[%s2889_s5] sm:$0xff]  ;;  %v2346_v24 = vmov 0.0   ;;  %v402_v25 = vshrl.u32 %v47_v30, 7  ;;  %s2350_s26 = smov [#allocation2]  }
  0x1e   :  { %1917 = vmatprep.subr.bf16.mxu0 %v2253_v26  ;;  %1986 = vmatprep.subr.bf16.mxu1 %v2254_v27  ;;  %v49_v34 = vadd.s32 128, %v48_v31  ;;  %v50_v35 = vadd.s32 256, %v48_v31  ;;  %v2525_v44 = vpack.c.bf16 %v549_v43, %v547_v42  ;;  %v551_v58 = vld [vmem:[%s2889_s5 + $0x28] sm:$0xff]  ;;  %v553_v59 = vld [vmem:[%s2889_s5 + $0x38] sm:$0xff]  ;;  %v2541_v61 = vpack.c.bf16 %v548_v57, %v546_v56  ;;  %v550_v1 = vld [vmem:[%s2889_s5 + $0x20] sm:$0xff]  ;;  %s1822_s27 = sshll.u32 %s2350_s26, 4  ;;  %s1823_s27 = int_to_ptr.vmem [resolvable:$true] %s1822_s27 }
  0x1f   :  { %v2543_v0 = vpack.c.bf16 %v553_v59, %v551_v58  ;;  %v552_v3 = vld [vmem:[%s2889_s5 + $0x30] sm:$0xff]  ;;  %v555_v5 = vld [vmem:[%s2889_s5 + $0x48] sm:$0xff]  ;;  %v557_v6 = vld [vmem:[%s2889_s5 + $0x58] sm:$0xff]  ;;  %v403_v26 = vsub.s32 0, %v402_v25  ;;  %p2325_p1 = scmp.lt.s32.totalorder %s1823_s27, %s1823_s27 }
  0x20   :  { %v2560_v10 = vpack.c.bf16 %v552_v3, %v550_v1  ;;  %v2565_v13 = vpack.c.bf16 %v557_v6, %v555_v5  ;;  %v554_v14 = vld [vmem:[%s2889_s5 + $0x40] sm:$0xff]  ;;  %v556_v15 = vld [vmem:[%s2889_s5 + $0x50] sm:$0xff]  ;;  %v559_v16 = vld [vmem:[%s2889_s5 + $0x68] sm:$0xff] }
  0x21   :  { %1918 = vmatpush3.bf16.msra.mxu0 %v2255_v28  ;;  %1987 = vmatpush3.bf16.msra.mxu1 %v2254_v27  ;;  %v561_v17 = vld [vmem:[%s2889_s5 + $0x78] sm:$0xff]  ;;  %v2582_v18 = vpack.c.bf16 %v556_v15, %v554_v14  ;;  %v558_v21 = vld [vmem:[%s2889_s5 + $0x60] sm:$0xff]  ;;  %v560_v22 = vld [vmem:[%s2889_s5 + $0x70] sm:$0xff]  ;;  %v407_v28 = vsub.s32 1, %v402_v25 }
  0x22   :  { %493 = vmatprep.subr.bf16.mxu0 %v2258_v29  ;;  %428 = vmatprep.subr.bf16.mxu1 %v2261_v41  ;;  %v2585_v20 = vpack.c.bf16 %v561_v17, %v559_v16  ;;  %v2597_v23 = vpack.c.bf16 %v560_v22, %v558_v21  ;;  %v399_v27 = vld [vmem:[%s2888_s4] sm:$0x3] }
  0x23   :  { %v2638_v21 = vld [vmem:[%s2890_s6] ss:$0 sm:$0xff] }
  0x81   :  { %v59_v32 = vpop.permute.xlu1 %58  ;;  %v53_v33 = vpop.permute.xlu0 %52 }
  0x82   :  { %vm71_vm0 = vcmp.eq.s32.totalorder %v50_v35, %v59_v32  ;;  %vm63_vm1 = vcmp.eq.s32.totalorder %v48_v31, %v53_v33  ;;  %vm64_vm4 = vcmp.eq.s32.totalorder %v49_v34, %v53_v33  ;;  %vm70_vm8 = vcmp.eq.s32.totalorder %v49_v34, %v59_v32 }
  0x83   :  { %vm65_vm11 = vcmp.eq.s32.totalorder %v50_v35, %v53_v33  ;;  %vm69_vm15 = vcmp.eq.s32.totalorder %v48_v31, %v59_v32  ;;  %v404_v32 = vrot.slane %v399_v27, %v403_v26 }
  0x85   :  { %v62_v36 = vpop.permute.xlu1 %61  ;;  %v56_v37 = vpop.permute.xlu0 %55 }
  0x86   :  { %vm66_vm2 = vcmp.eq.s32.totalorder %v48_v31, %v56_v37  ;;  %vm74_vm3 = vcmp.eq.s32.totalorder %v50_v35, %v62_v36  ;;  %vm67_vm5 = vcmp.eq.s32.totalorder %v49_v34, %v56_v37  ;;  %vm68_vm6 = vcmp.eq.s32.totalorder %v50_v35, %v56_v37 }
  0x87   :  { %vm1868_vm7 = vmpackc.low %vm66_vm2, %vm63_vm1  ;;  %vm73_vm9 = vcmp.eq.s32.totalorder %v49_v34, %v62_v36  ;;  %vm72_vm1 = vcmp.eq.s32.totalorder %v48_v31, %v62_v36  ;;  %v408_v35 = vrot.slane %v399_v27, %v407_v28 }
  0x88   :  { %vm1866_vm10 = vmpackc.low %vm67_vm5, %vm64_vm4  ;;  %vm1390_vm4 = vcmask 1043456   ;;  %vm1434_vm5 = vcmask 261120  }
  0x89   :  { %1867 = vmatprep.mubr.msk.bf16.mxu0 %vm1866_vm10, %v2345_v39  ;;  %vm1874_vm12 = vmpackc.low %vm68_vm6, %vm65_vm11  ;;  %vm2349_vm6 = vmmov 0  }
  0x8a   :  { %1988 = vmatprep.mubr.msk.bf16.mxu1 %vm1874_vm12, %v2345_v39  ;;  %1869 = vmatmul.mubr.msk.bf16.vlgmr.msra.gmra.mrb[0].mxu0 %vm1868_vm7, %v2345_v39  ;;  %vm1876_vm13 = vmpackc.low %vm74_vm3, %vm71_vm0  ;;  %vm421_vm0 = vcmask 130048   ;;  %vm577_vm3 = vcmask 523264   ;;  %vm1814_vm7 = vcmask 64512  }
  0x8b   :  { %1989 = vmatmul.mubr.msk.bf16.vlgmr.msra.gmra.mrb[0].mxu1 %vm1876_vm13, %v2345_v39  ;;  %vm1870_vm14 = vmpackc.low %vm73_vm9, %vm70_vm8  ;;  %494 = vmatpush1.bf16.msra.mxu0 %v2256_v38 }
  0x8c   :  { %1871 = vmatprep.mubr.msk.bf16.mxu0 %vm1870_vm14, %v2345_v39  ;;  %460 = vmatprep.mubr.bf16.mxu1 %v2344_v2  ;;  %vm1872_vm2 = vmpackc.low %vm72_vm1, %vm69_vm15 }
  0x8d   :  { %429 = vmatpush1.bf16.msra.mxu1 %v2259_v40  ;;  %2072 = vmatprep.subr.bf16.mxu0 %v2525_v44 }
  0x8e   :  { %2056 = vmatprep.subr.bf16.mxu1 %v2525_v44 }
  0x92   :  { %1873 = vmatmul.mubr.msk.bf16.gmra.mrb[4].mxu0 %vm1872_vm2, %v2345_v39 }
  0x93   :  { %525 = vmatprep.mubr.bf16.mxu0 %v2344_v2 }
 0x15d   :  { %v1919_v45 = vpop.f32.mrb[0].mxu0 }
 0x15e   :  { %v1990_v46 = vpop.f32.mrb[0].mxu1  ;;  %v1920_v47 = vpop.f32.mrb[1].mxu0 }
 0x15f   :  { %v1921_v48 = vadd.f32 %v1920_v47, %v1919_v45  ;;  %v380_v49 = vpop.f32.mrb[1].mxu1  ;;  %v1922_v50 = vpop.f32.mrb[2].mxu0 }
 0x160   :  { %v1991_v51 = vpop.f32.mrb[2].mxu1  ;;  %v1923_v52 = vpop.f32.mrb[3].mxu0 }
 0x161   :  { %v381_v53 = vadd.f32 %v1921_v48, %v380_v49  ;;  %v1924_v54 = vadd.f32 %v1923_v52, %v1922_v50  ;;  %v383_v55 = vpop.f32.mrb[3].mxu1 }
 0x163   :  { %v384_v60 = vadd.f32 %v1924_v54, %v383_v55 }
 0x165   :  { %v395_v62 = vpack.c.bf16 %v384_v60, %v381_v53  ;;  %v1925_v63 = vpop.f32.mrb[4].mxu0 }
 0x166   :  { %v1926_v4 = vpop.f32.mrb[5].mxu0 }
 0x167   :  { %v1927_v7 = vadd.f32 %v1926_v4, %v1925_v63  ;;  %v1928_v8 = vpop.f32.mrb[6].mxu0  ;;  %1880 = vmatmul.mubr.msk.bf16.vlgmr.msra.gmra.mrb[4].mxu1 %vm421_vm0, %v395_v62  ;;  %1884 = vmatmul.mubr.msk.bf16.vlgmr.msra.gmra.mrb[8].mxu0 %vm421_vm0, %v395_v62 }
 0x168   :  { %2058 = vmatpush1.bf16.msra.mxu1 %v2541_v61  ;;  %v1929_v9 = vpop.f32.mrb[7].mxu0  ;;  %470 = vmatprep.mubr.bf16.mxu1 %v2344_v2 }
 0x169   :  { %v389_v11 = vadd.f32 %v1990_v46, %v1927_v7  ;;  %v1930_v12 = vadd.f32 %v1929_v9, %v1928_v8  ;;  %2060 = vmatprep.subr.bf16.mxu1 %v2543_v0  ;;  %535 = vmatprep.mubr.bf16.mxu0 %v2344_v2 }
 0x16a   :  { %2074 = vmatpush1.bf16.msra.mxu0 %v2541_v61 }
 0x16b   :  { %v392_v2 = vadd.f32 %v1991_v51, %v1930_v12  ;;  %2076 = vmatprep.subr.bf16.mxu0 %v2543_v0 }
 0x16c   :  { %2062 = vmatpush1.bf16.msra.mxu1 %v2560_v10 }
 0x16d   :  { %v396_v19 = vpack.c.bf16 %v392_v2, %v389_v11  ;;  %2064 = vmatprep.subr.bf16.mxu1 %v2565_v13 }
 0x16e   :  { %2078 = vmatpush1.bf16.msra.mxu0 %v2560_v10 }
 0x16f   :  { %1881 = vmatmul.mubr.msk.bf16.gmra.mrb[8].mxu1 %vm421_vm0, %v396_v19  ;;  %1885 = vmatmul.mubr.msk.bf16.gmra.mrb[12].mxu0 %vm421_vm0, %v396_v19 }
 0x170   :  { %2066 = vmatpush1.bf16.msra.mxu1 %v2582_v18  ;;  %645 = vmatprep.mubr.f32.mxu1 %v2346_v24 }
 0x171   :  { %2068 = vmatprep.subr.bf16.mxu1 %v2585_v20  ;;  %2080 = vmatprep.subr.bf16.mxu0 %v2565_v13 }
 0x172   :  { %2082 = vmatpush1.bf16.msra.mxu0 %v2582_v18  ;;  %739 = vmatprep.mubr.f32.mxu0 %v2346_v24 }
 0x173   :  { %2084 = vmatprep.subr.bf16.mxu0 %v2585_v20 }
 0x174   :  { %2070 = vmatpush1.bf16.msra.mxu1 %v2597_v23 }
 0x175   :  { %2088 = vmatprep.subr.bf16.mxu1 %v2525_v44 }
 0x176   :  { %2086 = vmatpush1.bf16.msra.mxu0 %v2597_v23 }
 0x177   :  { %646 = vmatmul.mubr.f32.vlgmr.msra.gmra.mrb[12].mxu1 %v2346_v24  ;;  %2104 = vmatprep.subr.bf16.mxu0 %v2525_v44 }
 0x178   :  { %2090 = vmatpush1.bf16.msra.mxu1 %v2541_v61  ;;  %850 = vmatprep.mubr.f32.mxu1 %v2346_v24 }
 0x179   :  { %2092 = vmatprep.subr.bf16.mxu1 %v2543_v0 }
 0x17c   :  { %2094 = vmatpush1.bf16.msra.mxu1 %v2560_v10 }
 0x17d   :  { %2096 = vmatprep.subr.bf16.mxu1 %v2565_v13 }
 0x180   :  { %2098 = vmatpush1.bf16.msra.mxu1 %v2582_v18 }
 0x181   :  { %2100 = vmatprep.subr.bf16.mxu1 %v2585_v20 }
 0x184   :  { %2102 = vmatpush1.bf16.msra.mxu1 %v2597_v23 }
 0x185   :  { %2120 = vmatprep.subr.bf16.mxu1 %v2525_v44 }
 0x23a   :  { %v462_v29 = vpop.f32.mrb[4].mxu1  ;;  %v527_v31 = vpop.f32.mrb[8].mxu0 }
 0x23b   :  { %v464_v33 = vpop.f32.mrb[5].mxu1  ;;  %v529_v34 = vpop.f32.mrb[9].mxu0  ;;  %v463_v42 = vadd.f32 %v462_v29, %v404_v32  ;;  %v1186_v30 = vrot.slane %v527_v31, 4 }
 0x23c   :  { %v466_v36 = vpop.f32.mrb[6].mxu1  ;;  %v531_v37 = vpop.f32.mrb[10].mxu0  ;;  %v465_v46 = vadd.f32 %v464_v33, %v408_v35  ;;  %v1187_v52 = vrot.slane %v529_v34, 4 }
 0x23d   :  { %v467_v38 = vadd.f32 %v466_v36, %v404_v32  ;;  %v468_v39 = vpop.f32.mrb[7].mxu1  ;;  %v533_v40 = vpop.f32.mrb[11].mxu0  ;;  %v980_v47 = vrot.slane %v531_v37, 4 }
 0x23e   :  { %v469_v41 = vadd.f32 %v468_v39, %v408_v35  ;;  %v981_v53 = vrot.slane %v533_v40, 4 }
 0x242   :  { %v472_v43 = vpop.f32.mrb[8].mxu1  ;;  %v537_v45 = vpop.f32.mrb[12].mxu0 }
 0x243   :  { %v473_v48 = vadd.f32 %v472_v43, %v404_v32  ;;  %v774_v49 = vrot.slane %v537_v45, 4  ;;  %v474_v50 = vpop.f32.mrb[9].mxu1  ;;  %v539_v51 = vpop.f32.mrb[13].mxu0 }
 0x244   :  { %v475_v54 = vadd.f32 %v474_v50, %v408_v35  ;;  %v775_v55 = vrot.slane %v539_v51, 4  ;;  %v476_v56 = vpop.f32.mrb[10].mxu1  ;;  %v541_v57 = vpop.f32.mrb[14].mxu0 }
 0x245   :  { %v477_v58 = vadd.f32 %v476_v56, %v404_v32  ;;  %v571_v59 = vrot.slane %v541_v57, 4  ;;  %v478_v60 = vpop.f32.mrb[11].mxu1  ;;  %v543_v62 = vpop.f32.mrb[15].mxu0  ;;  %v2623_v63 = vadd.f32 %v774_v49, %v467_v38  ;;  %v2625_v1 = vadd.f32 %v980_v47, %v473_v48 }
 0x246   :  { %v2627_v3 = vadd.f32 %v981_v53, %v475_v54  ;;  %v2629_v4 = vadd.f32 %v775_v55, %v469_v41  ;;  %v479_v5 = vadd.f32 %v478_v60, %v408_v35  ;;  %v572_v6 = vrot.slane %v543_v62, 4 }
 0x247   :  { %v575_v7 = vadd.f32 %v571_v59, %v463_v42  ;;  %v2631_v8 = vadd.f32 %v1186_v30, %v477_v58 }
 0x248   :  { %v2633_v9 = vadd.f32 %v1187_v52, %v479_v5  ;;  %v576_v11 = vadd.f32 %v572_v6, %v465_v46 }
 0x24a   :  { %v647_v12 = vpop.f32.mrb[12].mxu1 }
 0x24b   :  { %v652_v14 = vadd.f32 %v647_v12, %v575_v7  ;;  %v649_v15 = vpop.f32.mrb[13].mxu1 }
 0x24c   :  { %v658_v22 = vadd.f32 %v2638_v21, %v649_v15 }
 0x24d   :  { %v653_v16 = vsub.f32 0.0, %v652_v14 }
 0x24f   :  { %v654_v17 = vmul.f32 1.442695, %v653_v16 }
 0x251   :  { %2262 = vpow2.f32 %v654_v17 }
 0x25b   :  { %v2263_v2 = vpop.eup %2262 }
 0x25c   :  { %v656_v19 = vadd.f32 1.0, %v2263_v2 }
 0x25e   :  { %2264 = vrcp.f32 %v656_v19 }
 0x268   :  { %v2265_v25 = vpop.eup %2264 }
 0x269   :  { %v659_v26 = vmul.f32 %v2265_v25, %v658_v22  ;;  %v662_v29 = vsub.f32 1.0, %v2265_v25  ;;  %v668_v32 = vmul.f32 0.0, %v2265_v25 }
 0x26b   :  { %v660_v27 = vadd.f32 %v659_v26, %v576_v11 }
 0x26d   :  { %2266 = vtanh.f32 %v660_v27 }
 0x277   :  { %v2267_v28 = vpop.eup %2266 }
 0x278   :  { %664 = vrot.lane.b32.xlu0 %v2267_v28, %s2347_s0 }
 0x2ea   :  { %v665_v31 = vpop.permute.xlu0 %664 }
 0x2eb   :  { %v667_v33 = vmul.f32 %v665_v31, %v662_v29 }
 0x2ed   :  { %v2642_v34 = vadd.f32 %v668_v32, %v667_v33 }
 0x2ef   :  { %671 = vrot.lane.b32.xlu1 %v2642_v34, %s2347_s0  ;;  %v768_v51 = vrot.slane %v2642_v34, 4 }
 0x361   :  { %v672_v35 = vpop.permute.xlu1 %671 }
 0x362   :  { %1887 = vmatmul.mubr.msk.f32.vlgmr.msra.gmra.mrb[16].mxu0 %vm577_vm3, %v672_v35 }
 0x363   :  { %2106 = vmatpush1.bf16.msra.mxu0 %v2541_v61  ;;  %945 = vmatprep.mubr.f32.mxu0 %v2346_v24 }
 0x364   :  { %2108 = vmatprep.subr.bf16.mxu0 %v2543_v0 }
 0x367   :  { %2110 = vmatpush1.bf16.msra.mxu0 %v2560_v10 }
 0x368   :  { %2112 = vmatprep.subr.bf16.mxu0 %v2565_v13 }
 0x36b   :  { %2114 = vmatpush1.bf16.msra.mxu0 %v2582_v18 }
 0x36c   :  { %2116 = vmatprep.subr.bf16.mxu0 %v2585_v20 }
 0x36f   :  { %2118 = vmatpush1.bf16.msra.mxu0 %v2597_v23 }
 0x370   :  { %2136 = vmatprep.subr.bf16.mxu0 %v2525_v44 }
 0x435   :  { %v741_v36 = vpop.f32.mrb[16].mxu0 }
 0x436   :  { %v747_v37 = vrot.slane %v741_v36, 4  ;;  %v743_v38 = vpop.f32.mrb[17].mxu0 }
 0x437   :  { %v755_v43 = vadd.f32 %v2638_v21, %v743_v38 }
 0x438   :  { %v749_v39 = vadd.f32 %v747_v37, %v575_v7 }
 0x439   :  { %v757_v45 = vrot.slane %v755_v43, 4 }
 0x43a   :  { %v750_v40 = vsub.f32 0.0, %v749_v39 }
 0x43c   :  { %v751_v41 = vmul.f32 1.442695, %v750_v40 }
 0x43e   :  { %2268 = vpow2.f32 %v751_v41 }
 0x448   :  { %v2269_v42 = vpop.eup %2268 }
 0x449   :  { %v753_v30 = vadd.f32 1.0, %v2269_v42 }
 0x44b   :  { %2270 = vrcp.f32 %v753_v30 }
 0x455   :  { %v2271_v46 = vpop.eup %2270 }
 0x456   :  { %v759_v47 = vmul.f32 %v2271_v46, %v757_v45  ;;  %v762_v50 = vsub.f32 1.0, %v2271_v46  ;;  %v770_v54 = vmul.f32 %v2271_v46, %v768_v51 }
 0x458   :  { %v760_v48 = vadd.f32 %v759_v47, %v576_v11 }
 0x45a   :  { %2272 = vtanh.f32 %v760_v48 }
 0x464   :  { %v2273_v49 = vpop.eup %2272 }
 0x465   :  { %764 = vrot.lane.b32.xlu0 %v2273_v49, %s2347_s0 }
 0x4d7   :  { %v765_v52 = vpop.permute.xlu0 %764 }
 0x4d8   :  { %v767_v53 = vmul.f32 %v765_v52, %v762_v50 }
 0x4da   :  { %v2661_v55 = vadd.f32 %v770_v54, %v767_v53 }
 0x4dc   :  { %v2664_v56 = vrot.slane %v2661_v55, 4 }
 0x4de   :  { %782 = vrot.lane.b32.xlu1 %v2664_v56, %s2347_s0 }
 0x550   :  { %v783_v57 = vpop.permute.xlu1 %782 }
 0x551   :  { %1888 = vmatmul.mubr.msk.f32.vlgmr.msra.gmra.mrb[14].mxu1 %vm577_vm3, %v783_v57 }
 0x552   :  { %2122 = vmatpush1.bf16.msra.mxu1 %v2541_v61  ;;  %1056 = vmatprep.mubr.f32.mxu1 %v2346_v24 }
 0x553   :  { %2124 = vmatprep.subr.bf16.mxu1 %v2543_v0 }
 0x556   :  { %2126 = vmatpush1.bf16.msra.mxu1 %v2560_v10 }
 0x557   :  { %2128 = vmatprep.subr.bf16.mxu1 %v2565_v13 }
 0x55a   :  { %2130 = vmatpush1.bf16.msra.mxu1 %v2582_v18 }
 0x55b   :  { %2132 = vmatprep.subr.bf16.mxu1 %v2585_v20 }
 0x55e   :  { %2134 = vmatpush1.bf16.msra.mxu1 %v2597_v23 }
 0x55f   :  { %2152 = vmatprep.subr.bf16.mxu1 %v2525_v44 }
 0x624   :  { %v852_v58 = vpop.f32.mrb[14].mxu1 }
 0x625   :  { %v857_v59 = vadd.f32 %v852_v58, %v2623_v63  ;;  %v854_v60 = vpop.f32.mrb[15].mxu1 }
 0x626   :  { %v863_v11 = vadd.f32 %v2638_v21, %v854_v60 }
 0x627   :  { %v858_v62 = vsub.f32 0.0, %v857_v59 }
 0x629   :  { %v859_v5 = vmul.f32 1.442695, %v858_v62 }
 0x62b   :  { %2274 = vpow2.f32 %v859_v5 }
 0x635   :  { %v2275_v6 = vpop.eup %2274 }
 0x636   :  { %v861_v7 = vadd.f32 1.0, %v2275_v6 }
 0x638   :  { %2276 = vrcp.f32 %v861_v7 }
 0x642   :  { %v2277_v12 = vpop.eup %2276 }
 0x643   :  { %v864_v14 = vmul.f32 %v2277_v12, %v863_v11  ;;  %v867_v17 = vsub.f32 1.0, %v2277_v12  ;;  %v874_v19 = vmul.f32 %v2277_v12, %v2664_v56 }
 0x645   :  { %v865_v15 = vadd.f32 %v864_v14, %v2629_v4 }
 0x647   :  { %2278 = vtanh.f32 %v865_v15 }
 0x651   :  { %v2279_v16 = vpop.eup %2278 }
 0x652   :  { %869 = vrot.lane.b32.xlu0 %v2279_v16, %s2347_s0 }
 0x6c4   :  { %v870_v2 = vpop.permute.xlu0 %869 }
 0x6c5   :  { %v872_v22 = vmul.f32 %v870_v2, %v867_v17 }
 0x6c7   :  { %v2683_v25 = vadd.f32 %v874_v19, %v872_v22 }
 0x6c9   :  { %877 = vrot.lane.b32.xlu1 %v2683_v25, %s2347_s0 }
 0x73b   :  { %v878_v26 = vpop.permute.xlu1 %877 }
 0x73c   :  { %1889 = vmatmul.mubr.msk.f32.vlgmr.msra.gmra.mrb[18].mxu0 %vm577_vm3, %v878_v26 }
 0x73d   :  { %2138 = vmatpush1.bf16.msra.mxu0 %v2541_v61  ;;  %1151 = vmatprep.mubr.f32.mxu0 %v2346_v24 }
 0x73e   :  { %2140 = vmatprep.subr.bf16.mxu0 %v2543_v0 }
 0x741   :  { %2142 = vmatpush1.bf16.msra.mxu0 %v2560_v10 }
 0x742   :  { %2144 = vmatprep.subr.bf16.mxu0 %v2565_v13 }
 0x745   :  { %2146 = vmatpush1.bf16.msra.mxu0 %v2582_v18 }
 0x746   :  { %2148 = vmatprep.subr.bf16.mxu0 %v2585_v20 }
 0x749   :  { %2150 = vmatpush1.bf16.msra.mxu0 %v2597_v23 }
 0x74a   :  { %2168 = vmatprep.subr.bf16.mxu0 %v2525_v44 }
 0x80f   :  { %v947_v27 = vpop.f32.mrb[18].mxu0 }
 0x810   :  { %v953_v28 = vrot.slane %v947_v27, 4  ;;  %v949_v29 = vpop.f32.mrb[19].mxu0 }
 0x811   :  { %v961_v37 = vadd.f32 %v2638_v21, %v949_v29 }
 0x812   :  { %v955_v31 = vadd.f32 %v953_v28, %v2623_v63  ;;  %v974_v63 = vrot.slane %v2683_v25, 4 }
 0x813   :  { %v963_v38 = vrot.slane %v961_v37, 4 }
 0x814   :  { %v956_v32 = vsub.f32 0.0, %v955_v31 }
 0x816   :  { %v957_v33 = vmul.f32 1.442695, %v956_v32 }
 0x818   :  { %2280 = vpow2.f32 %v957_v33 }
 0x822   :  { %v2281_v35 = vpop.eup %2280 }
 0x823   :  { %v959_v36 = vadd.f32 1.0, %v2281_v35 }
 0x825   :  { %2282 = vrcp.f32 %v959_v36 }
 0x82f   :  { %v2283_v39 = vpop.eup %2282 }
 0x830   :  { %v965_v40 = vmul.f32 %v2283_v39, %v963_v38  ;;  %v968_v42 = vsub.f32 1.0, %v2283_v39  ;;  %v976_v45 = vmul.f32 %v2283_v39, %v974_v63 }
 0x832   :  { %v966_v41 = vadd.f32 %v965_v40, %v2629_v4 }
 0x834   :  { %2284 = vtanh.f32 %v966_v41 }
 0x83e   :  { %v2285_v44 = vpop.eup %2284 }
 0x83f   :  { %970 = vrot.lane.b32.xlu0 %v2285_v44, %s2347_s0 }
 0x8b1   :  { %v971_v30 = vpop.permute.xlu0 %970 }
 0x8b2   :  { %v973_v43 = vmul.f32 %v971_v30, %v968_v42 }
 0x8b4   :  { %v2704_v46 = vadd.f32 %v976_v45, %v973_v43 }
 0x8b6   :  { %v2707_v47 = vrot.slane %v2704_v46, 4 }
 0x8b8   :  { %988 = vrot.lane.b32.xlu1 %v2707_v47, %s2347_s0 }
 0x92a   :  { %v989_v4 = vpop.permute.xlu1 %988 }
 0x92b   :  { %1890 = vmatmul.mubr.msk.f32.vlgmr.msra.gmra.mrb[16].mxu1 %vm577_vm3, %v989_v4 }
 0x92c   :  { %2154 = vmatpush1.bf16.msra.mxu1 %v2541_v61  ;;  %1262 = vmatprep.mubr.f32.mxu1 %v2346_v24 }
 0x92d   :  { %2156 = vmatprep.subr.bf16.mxu1 %v2543_v0 }
 0x930   :  { %2158 = vmatpush1.bf16.msra.mxu1 %v2560_v10 }
 0x931   :  { %2160 = vmatprep.subr.bf16.mxu1 %v2565_v13 }
 0x934   :  { %2162 = vmatpush1.bf16.msra.mxu1 %v2582_v18 }
 0x935   :  { %2164 = vmatprep.subr.bf16.mxu1 %v2585_v20 }
 0x938   :  { %2166 = vmatpush1.bf16.msra.mxu1 %v2597_v23 }
 0x9fe   :  { %v1058_v48 = vpop.f32.mrb[16].mxu1 }
 0x9ff   :  { %v1063_v49 = vadd.f32 %v1058_v48, %v2625_v1  ;;  %v1060_v50 = vpop.f32.mrb[17].mxu1 }
 0xa00   :  { %v1069_v58 = vadd.f32 %v2638_v21, %v1060_v50 }
 0xa01   :  { %v1064_v52 = vsub.f32 0.0, %v1063_v49 }
 0xa03   :  { %v1065_v53 = vmul.f32 1.442695, %v1064_v52 }
 0xa05   :  { %2286 = vpow2.f32 %v1065_v53 }
 0xa0f   :  { %v2287_v54 = vpop.eup %2286 }
 0xa10   :  { %v1067_v57 = vadd.f32 1.0, %v2287_v54  ;;  %v1391_v54 = vsel %vm1390_vm4, %v2642_v34, %v2661_v55 }
 0xa12   :  { %2288 = vrcp.f32 %v1067_v57  ;;  %v1392_v57 = vsel %vm1390_vm4, %v2683_v25, %v2704_v46 }
 0xa1c   :  { %v2289_v59 = vpop.eup %2288 }
 0xa1d   :  { %v1070_v60 = vmul.f32 %v2289_v59, %v1069_v58  ;;  %v1073_v6 = vsub.f32 1.0, %v2289_v59  ;;  %v1080_v11 = vmul.f32 %v2289_v59, %v2707_v47 }
 0xa1f   :  { %v1071_v62 = vadd.f32 %v1070_v60, %v2627_v3 }
 0xa21   :  { %2290 = vtanh.f32 %v1071_v62 }
 0xa2b   :  { %v2291_v5 = vpop.eup %2290 }
 0xa2c   :  { %1075 = vrot.lane.b32.xlu0 %v2291_v5, %s2347_s0 }
 0xa9e   :  { %v1076_v7 = vpop.permute.xlu0 %1075 }
 0xa9f   :  { %v1078_v12 = vmul.f32 %v1076_v7, %v1073_v6 }
 0xaa1   :  { %v2725_v14 = vadd.f32 %v1080_v11, %v1078_v12 }
 0xaa3   :  { %1083 = vrot.lane.b32.xlu1 %v2725_v14, %s2347_s0 }
 0xb15   :  { %v1084_v15 = vpop.permute.xlu1 %1083 }
 0xb16   :  { %1891 = vmatmul.mubr.msk.f32.vlgmr.msra.gmra.mrb[20].mxu0 %vm577_vm3, %v1084_v15 }
 0xb17   :  { %2170 = vmatpush1.bf16.msra.mxu0 %v2541_v61  ;;  %1357 = vmatprep.mubr.f32.mxu0 %v2346_v24 }
 0xb18   :  { %2172 = vmatprep.subr.bf16.mxu0 %v2543_v0 }
 0xb1b   :  { %2174 = vmatpush1.bf16.msra.mxu0 %v2560_v10 }
 0xb1c   :  { %2176 = vmatprep.subr.bf16.mxu0 %v2565_v13 }
 0xb1f   :  { %2178 = vmatpush1.bf16.msra.mxu0 %v2582_v18 }
 0xb20   :  { %2180 = vmatprep.subr.bf16.mxu0 %v2585_v20 }
 0xb23   :  { %2182 = vmatpush1.bf16.msra.mxu0 %v2597_v23 }
 0xbe9   :  { %v1153_v16 = vpop.f32.mrb[20].mxu0 }
 0xbea   :  { %v1159_v17 = vrot.slane %v1153_v16, 4  ;;  %v1155_v2 = vpop.f32.mrb[21].mxu0 }
 0xbeb   :  { %v1167_v10 = vadd.f32 %v2638_v21, %v1155_v2 }
 0xbec   :  { %v1161_v19 = vadd.f32 %v1159_v17, %v2625_v1  ;;  %v1180_v1 = vrot.slane %v2725_v14, 4 }
 0xbed   :  { %v1169_v13 = vrot.slane %v1167_v10, 4  ;;  %v1444_v10 = vld [vmem:[%s2892_s8 + $0x28] sm:$0xff] }
 0xbee   :  { %v1162_v61 = vsub.f32 0.0, %v1161_v19  ;;  %v1440_v19 = vld [vmem:[%s2892_s8 + $0x8] sm:$0xff] }
 0xbf0   :  { %v1163_v22 = vmul.f32 1.442695, %v1162_v61 }
 0xbf2   :  { %2292 = vpow2.f32 %v1163_v22 }
 0xbfc   :  { %v2293_v26 = vpop.eup %2292 }
 0xbfd   :  { %v1165_v0 = vadd.f32 1.0, %v2293_v26 }
 0xbff   :  { %2294 = vrcp.f32 %v1165_v0  ;;  %v1443_v0 = vld [vmem:[%s2892_s8 + $0x20] sm:$0xff] }
 0xc09   :  { %v2295_v27 = vpop.eup %2294 }
 0xc0a   :  { %v1171_v18 = vmul.f32 %v2295_v27, %v1169_v13  ;;  %v1174_v28 = vsub.f32 1.0, %v2295_v27  ;;  %v1182_v32 = vmul.f32 %v2295_v27, %v1180_v1  ;;  %v2191_v13 = vpack.c.bf16 %v1444_v10, %v1443_v0  ;;  %v1445_v27 = vld [vmem:[%s2892_s8 + $0x30] sm:$0xff] }
 0xc0c   :  { %v1172_v20 = vadd.f32 %v1171_v18, %v2627_v3  ;;  %v1446_v18 = vld [vmem:[%s2892_s8 + $0x38] sm:$0xff] }
 0xc0e   :  { %2296 = vtanh.f32 %v1172_v20  ;;  %v2195_v20 = vpack.c.bf16 %v1446_v18, %v1445_v27 }
 0xc18   :  { %v2297_v23 = vpop.eup %2296 }
 0xc19   :  { %1176 = vrot.lane.b32.xlu0 %v2297_v23, %s2347_s0 }
 0xc8b   :  { %v1177_v29 = vpop.permute.xlu0 %1176 }
 0xc8c   :  { %v1179_v31 = vmul.f32 %v1177_v29, %v1174_v28 }
 0xc8e   :  { %v1183_v33 = vadd.f32 %v1182_v32, %v1179_v31 }
 0xc90   :  { %v1193_v35 = vrot.slane %v1183_v33, 4  ;;  %v1393_v58 = vsel %vm1390_vm4, %v2725_v14, %v1183_v33 }
 0xc92   :  { %1194 = vrot.lane.b32.xlu1 %v1193_v35, %s2347_s0  ;;  %v1399_v61 = vsel %vm1390_vm4, %v1193_v35, %v1180_v1 }
 0xd04   :  { %v1195_v36 = vpop.permute.xlu1 %1194 }
 0xd05   :  { %1892 = vmatmul.mubr.msk.f32.vlgmr.msra.gmra.mrb[18].mxu1 %vm577_vm3, %v1195_v36 }
 0xdd8   :  { %v1264_v37 = vpop.f32.mrb[18].mxu1 }
 0xdd9   :  { %v1269_v3 = vadd.f32 %v1264_v37, %v2631_v8  ;;  %v1266_v38 = vpop.f32.mrb[19].mxu1  ;;  %v1400_v37 = vsel %vm1390_vm4, %v2707_v47, %v974_v63 }
 0xdda   :  { %v1275_v42 = vadd.f32 %v2638_v21, %v1266_v38 }
 0xddb   :  { %v1270_v39 = vsub.f32 0.0, %v1269_v3  ;;  %v1401_v3 = vsel %vm1390_vm4, %v2664_v56, %v768_v51 }
 0xddd   :  { %v1271_v40 = vmul.f32 1.442695, %v1270_v39 }
 0xddf   :  { %2298 = vpow2.f32 %v1271_v40 }
 0xde9   :  { %v2299_v41 = vpop.eup %2298 }
 0xdea   :  { %v1273_v44 = vadd.f32 1.0, %v2299_v41 }
 0xdec   :  { %2300 = vrcp.f32 %v1273_v44 }
 0xdf6   :  { %v2301_v30 = vpop.eup %2300 }
 0xdf7   :  { %v1276_v43 = vmul.f32 %v2301_v30, %v1275_v42  ;;  %v1279_v48 = vsub.f32 1.0, %v2301_v30  ;;  %v1286_v50 = vmul.f32 %v2301_v30, %v1193_v35  ;;  %v2348_v30 = vmov 0.0|0.0  }
 0xdf8   :  { %2199 = vmatprep.subr.bf16.mxu0 %v2348_v30 }
 0xdf9   :  { %v1277_v45 = vadd.f32 %v1276_v43, %v2633_v9  ;;  %v1726_v43 = vld [vmem:[%s2894_s10] sm:$0xff] }
 0xdfb   :  { %2302 = vtanh.f32 %v1277_v45  ;;  %v1727_v45 = vld [vmem:[%s2894_s10 + $0x8] sm:$0xff] }
 0xe05   :  { %v2303_v4 = vpop.eup %2302 }
 0xe06   :  { %1281 = vrot.lane.b32.xlu0 %v2303_v4, %s2347_s0  ;;  %v2212_v4 = vpack.c.bf16 %v1727_v45, %v1726_v43 }
 0xe78   :  { %v1282_v49 = vpop.permute.xlu0 %1281 }
 0xe79   :  { %v1284_v52 = vmul.f32 %v1282_v49, %v1279_v48  ;;  %v1894_v48 = vld [vmem:[%s2893_s9] ss:$0 sm:$0xff] }
 0xe7b   :  { %v1287_v53 = vadd.f32 %v1286_v50, %v1284_v52 }
 0xe7d   :  { %1289 = vrot.lane.b32.xlu1 %v1287_v53, %s2347_s0  ;;  %v1386_v28 = vrot.slane %v1287_v53, 4 }
 0xe81   :  { %1406 = vrot.lane.b32.xlu1 %v1391_v54, %s2347_s0 }
 0xe85   :  { %1408 = vrot.lane.b32.xlu1 %v1392_v57, %s2347_s0 }
 0xe89   :  { %1410 = vrot.lane.b32.xlu1 %v1393_v58, %s2347_s0 }
 0xeef   :  { %v1290_v59 = vpop.permute.xlu1 %1289 }
 0xef0   :  { %1893 = vmatmul.mubr.msk.f32.vlgmr.msra.gmra.mrb[22].mxu0 %vm577_vm3, %v1290_v59 }
 0xef1   :  { %2022 = vmatprep.mubr.msk.f32.mxu0 %vm2349_vm6, %v2346_v24 }
 0xef3   :  { %v1407_v38 = vpop.permute.xlu1 %1406 }
 0xef7   :  { %v1409_v40 = vpop.permute.xlu1 %1408 }
 0xefb   :  { %v1411_v34 = vpop.permute.xlu1 %1410 }
 0xfc3   :  { %v1359_v60 = vpop.f32.mrb[22].mxu0 }
 0xfc4   :  { %v1365_v62 = vrot.slane %v1359_v60, 4  ;;  %v1361_v5 = vpop.f32.mrb[23].mxu0 }
 0xfc5   :  { %v1373_v12 = vadd.f32 %v2638_v21, %v1361_v5  ;;  %v1441_v21 = vld [vmem:[%s2892_s8 + $0x10] sm:$0xff] }
 0xfc6   :  { %v1367_v55 = vadd.f32 %v1365_v62, %v2631_v8  ;;  %v1439_v8 = vld [vmem:[%s2892_s8] sm:$0xff] }
 0xfc7   :  { %v1375_v15 = vrot.slane %v1373_v12, 4  ;;  %v2183_v22 = vpack.c.bf16 %v1440_v19, %v1439_v8 }
 0xfc8   :  { %v1368_v6 = vsub.f32 0.0, %v1367_v55 }
 0xfc9   :  { %2184 = vmatprep.subr.bf16.mxu1 %v2183_v22 }
 0xfca   :  { %v1369_v7 = vmul.f32 1.442695, %v1368_v6  ;;  %2186 = vmatpush3.bf16.msra.mxu1 %v2183_v22 }
 0xfcc   :  { %2304 = vpow2.f32 %v1369_v7 }
 0xfd6   :  { %v2305_v11 = vpop.eup %2304 }
 0xfd7   :  { %v1371_v46 = vadd.f32 1.0, %v2305_v11 }
 0xfd9   :  { %2306 = vrcp.f32 %v1371_v46 }
 0xfe3   :  { %v2307_v14 = vpop.eup %2306 }
 0xfe4   :  { %v1377_v16 = vmul.f32 %v2307_v14, %v1375_v15  ;;  %v1380_v23 = vsub.f32 1.0, %v2307_v14  ;;  %v1388_v31 = vmul.f32 %v2307_v14, %v1386_v28 }
 0xfe6   :  { %v1378_v17 = vadd.f32 %v1377_v16, %v2633_v9  ;;  %v1442_v9 = vld [vmem:[%s2892_s8 + $0x18] sm:$0xff] }
 0xfe7   :  { %v2187_v26 = vpack.c.bf16 %v1442_v9, %v1441_v21 }
 0xfe8   :  { %2308 = vtanh.f32 %v1378_v17 }
 0xfe9   :  { %2188 = vmatprep.subr.bf16.mxu1 %v2187_v26 }
 0xfea   :  { %2190 = vmatpush3.bf16.msra.mxu1 %v2187_v26 }
 0xfeb   :  { %2192 = vmatprep.subr.bf16.mxu1 %v2191_v13 }
 0xfee   :  { %2194 = vmatpush3.bf16.msra.mxu1 %v2191_v13 }
 0xfef   :  { %2196 = vmatprep.subr.bf16.mxu1 %v2195_v20 }
 0xff2   :  { %v2309_v2 = vpop.eup %2308  ;;  %2198 = vmatpush3.bf16.msra.mxu1 %v2195_v20 }
 0xff3   :  { %1382 = vrot.lane.b32.xlu0 %v2309_v2, %s2347_s0  ;;  %2211 = vmatprep.subr.bf16.mxu1 %v2348_v30 }
 0xff7   :  { %1424 = vrot.lane.b32.xlu0 %v1399_v61, %s2347_s0 }
0x1065   :  { %v1383_v1 = vpop.permute.xlu0 %1382 }
0x1066   :  { %v1385_v29 = vmul.f32 %v1383_v1, %v1380_v23 }
0x1068   :  { %v1389_v32 = vadd.f32 %v1388_v31, %v1385_v29 }
0x1069   :  { %v1425_v39 = vpop.permute.xlu0 %1424 }
0x106a   :  { %v1396_v33 = vrot.slane %v1389_v32, 4  ;;  %v1394_v35 = vsel %vm1390_vm4, %v1287_v53, %v1389_v32  ;;  %v2808_v25 = vsel %vm1434_vm5, %v1409_v40, %v1425_v39  ;;  %v1732_v39 = vld [vmem:[%s2894_s10 + $0x30] sm:$0xff]  ;;  %v1733_v40 = vld [vmem:[%s2894_s10 + $0x38] sm:$0xff] }
0x106b   :  { %1412 = vrot.lane.b32.xlu1 %v1394_v35, %s2347_s0  ;;  %v1728_v35 = vld [vmem:[%s2894_s10 + $0x10] sm:$0xff] }
0x106c   :  { %v1398_v36 = vsel %vm1390_vm4, %v1396_v33, %v1386_v28  ;;  %v1576_v33 = vld [vmem:[%s2891_s7] sm:$0xff] }
0x106d   :  { %1422 = vrot.lane.b32.xlu0 %v1398_v36, %s2347_s0  ;;  %v1729_v36 = vld [vmem:[%s2894_s10 + $0x18] sm:$0xff] }
0x1071   :  { %1426 = vrot.lane.b32.xlu0 %v1400_v37, %s2347_s0  ;;  %v1730_v37 = vld [vmem:[%s2894_s10 + $0x20] sm:$0xff] }
0x1075   :  { %1428 = vrot.lane.b32.xlu0 %v1401_v3, %s2347_s0  ;;  %v2215_v3 = vpack.c.bf16 %v1729_v36, %v1728_v35 }
0x10dd   :  { %v1413_v56 = vpop.permute.xlu1 %1412 }
0x10df   :  { %v1423_v41 = vpop.permute.xlu0 %1422 }
0x10e0   :  { %v1435_v44 = vsel %vm1434_vm5, %v1407_v38, %v1423_v41  ;;  %v2221_v41 = vpack.c.bf16 %v1733_v40, %v1732_v39 }
0x10e1   :  { %2008 = vmatprep.mubr.msk.f32.mxu1 %vm577_vm3, %v1435_v44 }
0x10e2   :  { %2009 = vmatmul.mubr.msk.f32.vlgmr.msra.gmra.mrb[20].mxu1 %vm577_vm3, %v2808_v25 }
0x10e3   :  { %v1427_v63 = vpop.permute.xlu0 %1426  ;;  %2213 = vmatpush3.bf16.msra.mxu1 %v2212_v4 }
0x10e4   :  { %v1437_v51 = vsel %vm1434_vm5, %v1411_v34, %v1427_v63  ;;  %2214 = vmatprep.subr.bf16.mxu1 %v2348_v30 }
0x10e5   :  { %2011 = vmatprep.mubr.msk.f32.mxu1 %vm577_vm3, %v1437_v51 }
0x10e7   :  { %v1429_v47 = vpop.permute.xlu0 %1428  ;;  %2216 = vmatpush3.bf16.msra.mxu1 %v2215_v3 }
0x10e8   :  { %v1438_v42 = vsel %vm1434_vm5, %v1413_v56, %v1429_v47  ;;  %2217 = vmatprep.subr.bf16.mxu1 %v2348_v30  ;;  %v1901_v47 = vld [vmem:[%s2895_s11] ss:$0 sm:$0xff] }
0x10e9   :  { %2012 = vmatmul.mubr.msk.f32.gmra.mrb[22].mxu1 %vm577_vm3, %v1438_v42 }
0x10ea   :  { %2052 = vmatprep.mubr.msk.f32.mxu1 %vm2349_vm6, %v2346_v24 }
0x11b5   :  { %v2010_v49 = vpop.f32.mrb[20].mxu1 }
0x11b6   :  { %v1538_v50 = vadd.f32 %v2010_v49, %v1894_v48  ;;  %v1532_v52 = vpop.f32.mrb[21].mxu1 }
0x11b7   :  { %v1533_v53 = vadd.f32 %v1894_v48, %v1532_v52 }
0x11b8   :  { %v1552_v54 = vsel %vm577_vm3, %v1538_v50, -inf }
0x11b9   :  { %v1551_v57 = vsel %vm577_vm3, %v1533_v53, -inf }
0x11ba   :  { %v1555_v58 = vmax.f32 %v1551_v57, %v1552_v54 }
0x11bc   :  { %v2013_v59 = vpop.f32.mrb[22].mxu1 }
0x11bd   :  { %v1548_v60 = vadd.f32 %v2013_v59, %v1894_v48  ;;  %v1542_v62 = vpop.f32.mrb[23].mxu1 }
0x11be   :  { %v1543_v5 = vadd.f32 %v1894_v48, %v1542_v62 }
0x11bf   :  { %v1554_v55 = vsel %vm577_vm3, %v1548_v60, -inf }
0x11c0   :  { %v1553_v6 = vsel %vm577_vm3, %v1543_v5, -inf }
0x11c1   :  { %v1556_v7 = vmax.f32 %v1553_v6, %v1554_v55 }
0x11c3   :  { %v1557_v11 = vmax.f32 %v1555_v58, %v1556_v7 }
0x11c5   :  { %v1558_v46 = vrot.slane %v1557_v11, 4 }
0x11c7   :  { %v1559_v12 = vmax.f32 %v1557_v11, %v1558_v46 }
0x11c9   :  { %v1560_v15 = vrot.slane %v1559_v12, 2 }
0x11cb   :  { %v1561_v14 = vmax.f32 %v1559_v12, %v1560_v15 }
0x11cd   :  { %v1562_v16 = vrot.slane %v1561_v14, 1 }
0x11cf   :  { %v1563_v17 = vmax.f32 %v1561_v14, %v1562_v16 }
0x11d1   :  { %v1564_v2 = vsub.f32 %v1533_v53, %v1563_v17  ;;  %v1565_v8 = vsub.f32 %v1538_v50, %v1563_v17  ;;  %v1566_v19 = vsub.f32 %v1543_v5, %v1563_v17  ;;  %v1567_v21 = vsub.f32 %v1548_v60, %v1563_v17 }
0x11d3   :  { %v1572_v61 = vmul.f32 1.442695, %v1566_v19  ;;  %v1568_v22 = vmul.f32 1.442695, %v1564_v2  ;;  %v1570_v9 = vmul.f32 1.442695, %v1565_v8 }
0x11d4   :  { %v1574_v26 = vmul.f32 1.442695, %v1567_v21 }
0x11d5   :  { %2310 = vpow2.f32 %v1572_v61 }
0x11d6   :  { %2312 = vpow2.f32 %v1568_v22 }
0x11d7   :  { %2314 = vpow2.f32 %v1570_v9 }
0x11d8   :  { %2316 = vpow2.f32 %v1574_v26 }
0x11df   :  { %v2311_v0 = vpop.eup %2310 }
0x11e0   :  { %v2313_v10 = vpop.eup %2312  ;;  %v1653_v18 = vmul.f32 %v2311_v0, %v1437_v51 }
0x11e1   :  { %v2315_v13 = vpop.eup %2314  ;;  %v1651_v27 = vmul.f32 %v2313_v10, %v1435_v44 }
0x11e2   :  { %v2317_v20 = vpop.eup %2316  ;;  %v2200_v23 = vpack.c.bf16 %v2315_v13, %v2313_v10  ;;  %v1652_v28 = vmul.f32 %v2315_v13, %v2808_v25 }
0x11e3   :  { %v2203_v1 = vpack.c.bf16 %v2317_v20, %v2311_v0  ;;  %v1654_v29 = vmul.f32 %v2317_v20, %v1438_v42 }
0x11e4   :  { %2201 = vmatpush3.bf16.msra.mxu0 %v2200_v23  ;;  %v2206_v31 = vpack.c.bf16 %v1652_v28, %v1651_v27 }
0x11e5   :  { %2202 = vmatprep.subr.bf16.mxu0 %v2348_v30  ;;  %v2209_v32 = vpack.c.bf16 %v1654_v29, %v1653_v18 }
0x11e8   :  { %2204 = vmatpush3.bf16.msra.mxu0 %v2203_v1 }
0x11e9   :  { %2205 = vmatprep.subr.bf16.mxu0 %v2348_v30 }
0x11eb   :  { %2023 = vmatmul.mubr.msk.f32.vlgmr.msra.gmra.mrb[24].mxu0 %vm1434_vm5, %v1576_v33 }
0x11ec   :  { %2207 = vmatpush3.bf16.msra.mxu0 %v2206_v31  ;;  %2033 = vmatprep.mubr.msk.f32.mxu0 %vm2349_vm6, %v2346_v24  ;;  %v1731_v24 = vld [vmem:[%s2894_s10 + $0x28] sm:$0xff]  ;;  %s2320_s10 = scalar_lea.vmem %s1823_s27, 128 }
0x11ed   :  { %2208 = vmatprep.subr.bf16.mxu0 %v2348_v30  ;;  %v2218_v38 = vpack.c.bf16 %v1731_v24, %v1730_v37  ;;  %p2321_p0 = scmp.ne.s32.totalorder %s1823_s27, %s2320_s10  ;;  %p2326_p2 = scmp.lt.s32.totalorder %s2320_s10, %s2320_s10 }
0x11ef   :  { %2219 = vmatpush3.bf16.msra.mxu1 %v2218_v38  ;;  %p2327_p3 = por %p2326_p2, %p2325_p1 }
0x11f0   :  { %2210 = vmatpush3.bf16.msra.mxu0 %v2209_v32  ;;  %2220 = vmatprep.subr.bf16.mxu1 %v2348_v30 }
0x11f1   :  { %p2328_p4 = pnand %p2327_p3, %p2321_p0 }
0x11f3   :  { %2034 = vmatmul.mubr.msk.f32.vlgmr.msra.gmra.mrb[26].mxu0 %vm1434_vm5, %v1576_v33  ;;  %2222 = vmatpush3.bf16.msra.mxu1 %v2221_v41 }
0x12be   :  { %v1646_v44 = vpop.f32.mrb[24].mxu0 }
0x12bf   :  { %2318 = vrcp.f32 %v1646_v44  ;;  %v2024_v25 = vpop.f32.mrb[25].mxu0 }
0x12c6   :  { %v1721_v34 = vpop.f32.mrb[26].mxu0 }
0x12c7   :  { %v2035_v63 = vpop.f32.mrb[27].mxu0 }
0x12c9   :  { %v2319_v51 = vpop.eup %2318 }
0x12ca   :  { %v1725_v56 = vmul.f32 %v2319_v51, %v1721_v34 }
0x12cc   :  { %2053 = vmatmul.mubr.msk.f32.vlgmr.msra.gmra.mrb[24].mxu1 %vm577_vm3, %v1725_v56 }
0x139f   :  { %v1810_v42 = vpop.f32.mrb[24].mxu1 }
0x13a0   :  { %v1811_v30 = vadd.f32 %v1901_v47, %v1810_v42  ;;  %v2054_v43 = vpop.f32.mrb[25].mxu1 }
0x13a2   :  { %1815 = vst.msk [vmem:[#allocation2] sm:$0xff] %vm1814_vm7, %v1811_v30 }
0x13a3   :  { %2331 = shalt.err (!%p2328_p4)
}
0x13a4   :  { %s2332_s2 = scalar_lea.hbm %s2896_s12, 128 }
0x13a5   :  { %p2333_p5 = scmp.ne.s32.totalorder %s2896_s12, %s2332_s2  ;;  %p2336_p6 = scmp.lt.u32.totalorder %s2332_s2, %s2896_s12 }
0x13a7   :  { %p2338_p7 = pnand %p2336_p6, %p2333_p5 }
0x13a9   :  { %2341 = shalt.err (!%p2338_p7)
}
0x13aa   :  { %1825 = dma.vmem_to_hbm [thread:$0]  %s1823_s27, 128, %s2896_s12, [#allocation3]  }
0x13ab   :  { %2342 = dma.done.wait [#allocation3], 128  }
0x13ac   :  { %2343 = vsyncadd [#allocation3], 4294967168 }
0x13ad   :  { %1829 = vsyncpa [#allocation3], 1 }

</bundles_post_ra>
